<compile_context>
chip_gen: v6e
topology: v6e:2x2x1
jax: 0.10.0
libtpu: 0.0.40
codegen_flags: <defaults>
</compile_context>

<pallas_src>
import jax
import jax.numpy as jnp
from jax import lax
from jax.experimental import pallas as pl
from jax.experimental.pallas import tpu as pltpu


def _round_up(v, m):
    return (v + m - 1) // m * m


# ------------------------------- kernel --------------------------------------


def _make_kernel(C, H, W, PW, PE):
    """Build the fused BinResBlock kernel for fixed sizes (3x3, dilation=1)."""
    Wp = W + 2
    tap_offs = tuple(kh * Wp + kw for kh in range(3) for kw in range(3))
    shift = Wp + 1  # offset of grid cell (1, 1) in the flattened padded grid

    def kernel(x_ref, y_ref, z_ref, h_ref, mask_ref,
               w1a_ref, w1b_ref, w2_ref, b1_ref, b2_ref,
               out_ref,
               m1_ref, mh_ref, q_ref, m2_ref):
        f32 = jnp.float32

        # ---- build K-folded im2col operands in VMEM scratch ------------------
        # m1 rows = (tap, ci); columns = [x | y | z] branch blocks of width PW.
        # mh rows = (tap, ci) for the shared H_pre half of the channel concat.
        for t, off in enumerate(tap_offs):
            r0, r1 = t * C, (t + 1) * C
            m1_ref[r0:r1, 0:PW]          = x_ref[0, :, off:off + PW]
            m1_ref[r0:r1, PW:2 * PW]     = y_ref[0, :, off:off + PW]
            m1_ref[r0:r1, 2 * PW:3 * PW] = z_ref[0, :, off:off + PW]
            mh_ref[r0:r1, :]             = h_ref[0, :, off:off + PW]

        # ---- stage 1: one MXU op for all three branches + shared H_pre term --
        a = jnp.dot(w1a_ref[...], m1_ref[...],
                    preferred_element_type=f32)                     # (C, 3*PW)
        shared = jnp.dot(w1b_ref[...], mh_ref[...],
                         preferred_element_type=f32) + b1_ref[...]  # (C, PW)
        mask = mask_ref[...]                                        # (1, PW)

        xo = jnp.maximum(a[:, 0:PW] + shared, 0.0) * mask
        yo = jnp.maximum(a[:, PW:2 * PW] + shared, 0.0) * mask
        zo = jnp.maximum(a[:, 2 * PW:3 * PW] + shared, 0.0) * mask

        # ---- stage 2: rebuild zero-padded grids of the outputs in VMEM -------
        # q holds cat([x_out, y_out, z_out]) embedded at grid offset (1, 1);
        # the mask above already zeroed everything outside the valid interior.
        q_ref[...] = jnp.zeros_like(q_ref)
        q_ref[0 * C:1 * C, shift:shift + PW] = xo
        q_ref[1 * C:2 * C, shift:shift + PW] = yo
        q_ref[2 * C:3 * C, shift:shift + PW] = zo

        for t, off in enumerate(tap_offs):
            m2_ref[t * 3 * C:(t + 1) * 3 * C, :] = q_ref[:, off:off + PW]

        ho = (jnp.dot(w2_ref[...], m2_ref[...],
                      preferred_element_type=f32)                   # (C, PW)
              + b2_ref[...] + h_ref[0, :, shift:shift + PW])

        # Single lane-/sublane-dense output slab: [x_out | y_out | z_out | H_out]
        out_ref[0] = jnp.concatenate([xo, yo, zo, ho], axis=0)      # (4C, PW)

    return kernel


# ------------------------------- wrapper -------------------------------------


def bin_res_block_forward(x, y, z, h_pre, params):
    """x, y, z, h_pre: NCHW float32 arrays of identical shape (N, C, H, W)."""
    w1, b1, w2, b2 = params["w1"], params["b1"], params["w2"], params["b2"]
    N, C, H, W = x.shape
    Hp, Wp = H + 2, W + 2
    P = Hp * Wp                              # flattened zero-padded grid size
    PW = _round_up(P, 128)                   # lane-aligned compute/store width
    PE = _round_up(PW + 2 * Wp + 2, 128)     # source width (max tap offset)
    f32 = jnp.float32

    # NCHW -> flattened zero-padded grid (N, C, PE); no transposes.
    def prep(a):
        ap = jnp.pad(a.astype(f32), ((0, 0), (0, 0), (1, 1), (1, 1)))
        ap = ap.reshape(N, C, P)
        return jnp.pad(ap, ((0, 0), (0, 0), (0, PE - P)))

    xf, yf, zf, hf = map(prep, (x, y, z, h_pre))

    # Conv weight (Cout, Cin, 3, 3) -> tap-folded (Cout, 9*Cin),
    # K index = (kh*3 + kw)*Cin + ci, matching the im2col row layout.
    def fold(w):
        return jnp.transpose(w.astype(f32), (0, 2, 3, 1)).reshape(w.shape[0], -1)

    w1a = fold(w1[:, :C])        # branch half of the conv1 channel concat
    w1b = fold(w1[:, C:])        # shared H_pre half
    w2m = fold(w2)               # (C, 27*C)
    b1c = b1.astype(f32).reshape(C, 1)
    b2c = b2.astype(f32).reshape(C, 1)

    # Validity mask over the flattened padded grid (1 on real output pixels).
    idx = jnp.arange(PW, dtype=jnp.int32)
    mask = (((idx // Wp) < H) & ((idx % Wp) < W)).astype(f32).reshape(1, PW)

    src_spec = pl.BlockSpec((1, C, PE), lambda n: (n, 0, 0))
    out_spec = pl.BlockSpec((1, 4 * C, PW), lambda n: (n, 0, 0))

    def bcast(shape):
        return pl.BlockSpec(shape, lambda n: (0,) * len(shape))

    kernel = _make_kernel(C, H, W, PW, PE)

    out = pl.pallas_call(
        kernel,
        out_shape=jax.ShapeDtypeStruct((N, 4 * C, PW), f32),
        grid_spec=pltpu.PrefetchScalarGridSpec(
            num_scalar_prefetch=0,
            grid=(N,),
            in_specs=[src_spec, src_spec, src_spec, src_spec,
                      bcast((1, PW)),
                      bcast((C, 9 * C)), bcast((C, 9 * C)), bcast((C, 27 * C)),
                      bcast((C, 1)), bcast((C, 1))],
            out_specs=out_spec,
            scratch_shapes=[
                pltpu.VMEM((9 * C, 3 * PW), f32),   # m1: im2col of x|y|z
                pltpu.VMEM((9 * C, PW), f32),       # mh: im2col of H_pre
                pltpu.VMEM((3 * C, PE), f32),       # q : padded cat(x,y,z out)
                pltpu.VMEM((27 * C, PW), f32),      # m2: im2col for conv2
            ]),
        compiler_params=pltpu.CompilerParams(
            dimension_semantics=("parallel",)),
    )(xf, yf, zf, hf, mask, w1a, w1b, w2m, b1c, b2c)

    # (N, 4C, PW) flat grid -> 4x (N, C, H, W): slice + reshape + crop only.
    def crop(o):
        return o[:, :, :P].reshape(N, C, Hp, Wp)[:, :, :H, :W]

    return (crop(out[:, 0 * C:1 * C]), crop(out[:, 1 * C:2 * C]),
            crop(out[:, 2 * C:3 * C]), crop(out[:, 3 * C:4 * C]))


# ------------------------------ reference ------------------------------------


def _ref_forward(x, y, z, h_pre, params):
    """Pure-JAX NCHW reference mirroring the PyTorch module."""
    dn = ("NCHW", "OIHW", "NCHW")

    def conv(inp, w, b):
        o = lax.conv_general_dilated(inp, w, window_strides=(1, 1),
                                     padding=((1, 1), (1, 1)),
                                     dimension_numbers=dn)
        return o + b.reshape(1, -1, 1, 1)

    relu = lambda a: jnp.maximum(a, 0.0)
    xo = relu(conv(jnp.concatenate([x, h_pre], 1), params["w1"], params["b1"]))
    yo = relu(conv(jnp.concatenate([y, h_pre], 1), params["w1"], params["b1"]))
    zo = relu(conv(jnp.concatenate([z, h_pre], 1), params["w1"], params["b1"]))
    ho = conv(jnp.concatenate([xo, yo, zo], 1), params["w2"], params["b2"]) + h_pre
    return xo, yo, zo, ho


# --------------------------------- main ---------------------------------------


if __name__ == "__main__":
    N, C, H, W = 2, 4, 16, 16  # inplanes = C
    key = jax.random.PRNGKey(0)
    kx, ky, kz, kh, kw1, kb1, kw2, kb2 = jax.random.split(key, 8)

    x = jax.random.normal(kx, (N, C, H, W), jnp.float32)
    y = jax.random.normal(ky, (N, C, H, W), jnp.float32)
    z = jax.random.normal(kz, (N, C, H, W), jnp.float32)
    h_pre = jax.random.normal(kh, (N, C, H, W), jnp.float32)

    # Deterministic parameter init (shapes from nn.Conv2d in __init__).
    params = {
        "w1": 0.1 * jax.random.normal(kw1, (C, 2 * C, 3, 3), jnp.float32),
        "b1": 0.1 * jax.random.normal(kb1, (C,), jnp.float32),
        "w2": 0.1 * jax.random.normal(kw2, (C, 3 * C, 3, 3), jnp.float32),
        "b2": 0.1 * jax.random.normal(kb2, (C,), jnp.float32),
    }

    fwd = jax.jit(bin_res_block_forward)
    outs = fwd(x, y, z, h_pre, params)
    outs = jax.tree_util.tree_map(jax.block_until_ready, outs)

    refs = _ref_forward(x, y, z, h_pre, params)
    for o, r in zip(outs, refs):
        assert o.shape == r.shape and o.dtype == r.dtype
        assert jnp.max(jnp.abs(o - r)) < 1e-4, "mismatch vs reference"

    print("KERNEL_OK")
</pallas_src>

<mosaic_0001>
module attributes {stable_mosaic.version = 11 : i64} {
  func.func @kernel(%arg0: i32, %arg1: memref<1x4x512xf32, #tpu.memory_space<vmem>>, %arg2: memref<1x4x512xf32, #tpu.memory_space<vmem>>, %arg3: memref<1x4x512xf32, #tpu.memory_space<vmem>>, %arg4: memref<1x4x512xf32, #tpu.memory_space<vmem>>, %arg5: memref<1x384xf32, #tpu.memory_space<vmem>>, %arg6: memref<4x36xf32, #tpu.memory_space<vmem>>, %arg7: memref<4x36xf32, #tpu.memory_space<vmem>>, %arg8: memref<4x108xf32, #tpu.memory_space<vmem>>, %arg9: memref<4x1xf32, #tpu.memory_space<vmem>>, %arg10: memref<4x1xf32, #tpu.memory_space<vmem>>, %arg11: memref<1x16x384xf32, #tpu.memory_space<vmem>>, %arg12: memref<36x1152xf32, #tpu.memory_space<vmem>>, %arg13: memref<36x384xf32, #tpu.memory_space<vmem>>, %arg14: memref<12x512xf32, #tpu.memory_space<vmem>>, %arg15: memref<108x384xf32, #tpu.memory_space<vmem>>) attributes {dimension_semantics = [#tpu.dimension_semantics<parallel>], iteration_bounds = array<i64: 2>, scalar_prefetch = 0 : i64, scratch_operands = 4 : i64, tpu.core_type = #tpu.core_type<tc>, window_params = [{transform_indices = @transform_0, window_bounds = array<i64: 1, 4, 512>}, {transform_indices = @transform_1, window_bounds = array<i64: 1, 4, 512>}, {transform_indices = @transform_2, window_bounds = array<i64: 1, 4, 512>}, {transform_indices = @transform_3, window_bounds = array<i64: 1, 4, 512>}, {pipeline_mode = #tpu.pipeline_mode<synchronous>, transform_indices = @transform_4, window_bounds = array<i64: 1, 384>}, {pipeline_mode = #tpu.pipeline_mode<synchronous>, transform_indices = @transform_5, window_bounds = array<i64: 4, 36>}, {pipeline_mode = #tpu.pipeline_mode<synchronous>, transform_indices = @transform_6, window_bounds = array<i64: 4, 36>}, {pipeline_mode = #tpu.pipeline_mode<synchronous>, transform_indices = @transform_7, window_bounds = array<i64: 4, 108>}, {pipeline_mode = #tpu.pipeline_mode<synchronous>, transform_indices = @transform_8, window_bounds = array<i64: 4, 1>}, {pipeline_mode = #tpu.pipeline_mode<synchronous>, transform_indices = @transform_9, window_bounds = array<i64: 4, 1>}, {transform_indices = @transform_10, window_bounds = array<i64: 1, 16, 384>}]} {
    %c0 = arith.constant 0 : index
    %c0_0 = arith.constant 0 : index
    %c0_1 = arith.constant 0 : index
    %0 = vector.load %arg1[%c0, %c0_0, %c0_1] : memref<1x4x512xf32, #tpu.memory_space<vmem>>, vector<1x4x384xf32>
    %1 = vector.shape_cast %0 : vector<1x4x384xf32> to vector<4x384xf32>
    %c0_2 = arith.constant 0 : index
    %c0_3 = arith.constant 0 : index
    %2 = vector.load %arg12[%c0_2, %c0_3] : memref<36x1152xf32, #tpu.memory_space<vmem>>, vector<4x384xf32>
    tpu.vector_store %arg12[%c0_2, %c0_3], %1 {strides = array<i32>} : memref<36x1152xf32, #tpu.memory_space<vmem>>, vector<4x384xf32>,
    %c0_4 = arith.constant 0 : index
    %c0_5 = arith.constant 0 : index
    %c0_6 = arith.constant 0 : index
    %3 = vector.load %arg2[%c0_4, %c0_5, %c0_6] : memref<1x4x512xf32, #tpu.memory_space<vmem>>, vector<1x4x384xf32>
    %4 = vector.shape_cast %3 : vector<1x4x384xf32> to vector<4x384xf32>
    %c0_7 = arith.constant 0 : index
    %c384 = arith.constant 384 : index
    %5 = vector.load %arg12[%c0_7, %c384] : memref<36x1152xf32, #tpu.memory_space<vmem>>, vector<4x384xf32>
    tpu.vector_store %arg12[%c0_7, %c384], %4 {strides = array<i32>} : memref<36x1152xf32, #tpu.memory_space<vmem>>, vector<4x384xf32>,
    %c0_8 = arith.constant 0 : index
    %c0_9 = arith.constant 0 : index
    %c0_10 = arith.constant 0 : index
    %6 = vector.load %arg3[%c0_8, %c0_9, %c0_10] : memref<1x4x512xf32, #tpu.memory_space<vmem>>, vector<1x4x384xf32>
    %7 = vector.shape_cast %6 : vector<1x4x384xf32> to vector<4x384xf32>
    %c0_11 = arith.constant 0 : index
    %c768 = arith.constant 768 : index
    %8 = vector.load %arg12[%c0_11, %c768] : memref<36x1152xf32, #tpu.memory_space<vmem>>, vector<4x384xf32>
    tpu.vector_store %arg12[%c0_11, %c768], %7 {strides = array<i32>} : memref<36x1152xf32, #tpu.memory_space<vmem>>, vector<4x384xf32>,
    %c0_12 = arith.constant 0 : index
    %c0_13 = arith.constant 0 : index
    %c0_14 = arith.constant 0 : index
    %9 = vector.load %arg4[%c0_12, %c0_13, %c0_14] : memref<1x4x512xf32, #tpu.memory_space<vmem>>, vector<1x4x384xf32>
    %10 = vector.shape_cast %9 : vector<1x4x384xf32> to vector<4x384xf32>
    %c0_15 = arith.constant 0 : index
    %c0_16 = arith.constant 0 : index
    %11 = vector.load %arg13[%c0_15, %c0_16] : memref<36x384xf32, #tpu.memory_space<vmem>>, vector<4x384xf32>
    tpu.vector_store %arg13[%c0_15, %c0_16], %10 {strides = array<i32>} : memref<36x384xf32, #tpu.memory_space<vmem>>, vector<4x384xf32>,
    %c0_17 = arith.constant 0 : index
    %c0_18 = arith.constant 0 : index
    %c1 = arith.constant 1 : index
    %12 = vector.load %arg1[%c0_17, %c0_18, %c1] : memref<1x4x512xf32, #tpu.memory_space<vmem>>, vector<1x4x384xf32>
    %13 = vector.shape_cast %12 : vector<1x4x384xf32> to vector<4x384xf32>
    %c4 = arith.constant 4 : index
    %c0_19 = arith.constant 0 : index
    %14 = vector.load %arg12[%c4, %c0_19] : memref<36x1152xf32, #tpu.memory_space<vmem>>, vector<4x384xf32>
    tpu.vector_store %arg12[%c4, %c0_19], %13 {strides = array<i32>} : memref<36x1152xf32, #tpu.memory_space<vmem>>, vector<4x384xf32>,
    %c0_20 = arith.constant 0 : index
    %c0_21 = arith.constant 0 : index
    %c1_22 = arith.constant 1 : index
    %15 = vector.load %arg2[%c0_20, %c0_21, %c1_22] : memref<1x4x512xf32, #tpu.memory_space<vmem>>, vector<1x4x384xf32>
    %16 = vector.shape_cast %15 : vector<1x4x384xf32> to vector<4x384xf32>
    %c4_23 = arith.constant 4 : index
    %c384_24 = arith.constant 384 : index
    %17 = vector.load %arg12[%c4_23, %c384_24] : memref<36x1152xf32, #tpu.memory_space<vmem>>, vector<4x384xf32>
    tpu.vector_store %arg12[%c4_23, %c384_24], %16 {strides = array<i32>} : memref<36x1152xf32, #tpu.memory_space<vmem>>, vector<4x384xf32>,
    %c0_25 = arith.constant 0 : index
    %c0_26 = arith.constant 0 : index
    %c1_27 = arith.constant 1 : index
    %18 = vector.load %arg3[%c0_25, %c0_26, %c1_27] : memref<1x4x512xf32, #tpu.memory_space<vmem>>, vector<1x4x384xf32>
    %19 = vector.shape_cast %18 : vector<1x4x384xf32> to vector<4x384xf32>
    %c4_28 = arith.constant 4 : index
    %c768_29 = arith.constant 768 : index
    %20 = vector.load %arg12[%c4_28, %c768_29] : memref<36x1152xf32, #tpu.memory_space<vmem>>, vector<4x384xf32>
    tpu.vector_store %arg12[%c4_28, %c768_29], %19 {strides = array<i32>} : memref<36x1152xf32, #tpu.memory_space<vmem>>, vector<4x384xf32>,
    %c0_30 = arith.constant 0 : index
    %c0_31 = arith.constant 0 : index
    %c1_32 = arith.constant 1 : index
    %21 = vector.load %arg4[%c0_30, %c0_31, %c1_32] : memref<1x4x512xf32, #tpu.memory_space<vmem>>, vector<1x4x384xf32>
    %22 = vector.shape_cast %21 : vector<1x4x384xf32> to vector<4x384xf32>
    %c4_33 = arith.constant 4 : index
    %c0_34 = arith.constant 0 : index
    %23 = vector.load %arg13[%c4_33, %c0_34] : memref<36x384xf32, #tpu.memory_space<vmem>>, vector<4x384xf32>
    tpu.vector_store %arg13[%c4_33, %c0_34], %22 {strides = array<i32>} : memref<36x384xf32, #tpu.memory_space<vmem>>, vector<4x384xf32>,
    %c0_35 = arith.constant 0 : index
    %c0_36 = arith.constant 0 : index
    %c2 = arith.constant 2 : index
    %24 = vector.load %arg1[%c0_35, %c0_36, %c2] : memref<1x4x512xf32, #tpu.memory_space<vmem>>, vector<1x4x384xf32>
    %25 = vector.shape_cast %24 : vector<1x4x384xf32> to vector<4x384xf32>
    %c8 = arith.constant 8 : index
    %c0_37 = arith.constant 0 : index
    %26 = vector.load %arg12[%c8, %c0_37] : memref<36x1152xf32, #tpu.memory_space<vmem>>, vector<4x384xf32>
    tpu.vector_store %arg12[%c8, %c0_37], %25 {strides = array<i32>} : memref<36x1152xf32, #tpu.memory_space<vmem>>, vector<4x384xf32>,
    %c0_38 = arith.constant 0 : index
    %c0_39 = arith.constant 0 : index
    %c2_40 = arith.constant 2 : index
    %27 = vector.load %arg2[%c0_38, %c0_39, %c2_40] : memref<1x4x512xf32, #tpu.memory_space<vmem>>, vector<1x4x384xf32>
    %28 = vector.shape_cast %27 : vector<1x4x384xf32> to vector<4x384xf32>
    %c8_41 = arith.constant 8 : index
    %c384_42 = arith.constant 384 : index
    %29 = vector.load %arg12[%c8_41, %c384_42] : memref<36x1152xf32, #tpu.memory_space<vmem>>, vector<4x384xf32>
    tpu.vector_store %arg12[%c8_41, %c384_42], %28 {strides = array<i32>} : memref<36x1152xf32, #tpu.memory_space<vmem>>, vector<4x384xf32>,
    %c0_43 = arith.constant 0 : index
    %c0_44 = arith.constant 0 : index
    %c2_45 = arith.constant 2 : index
    %30 = vector.load %arg3[%c0_43, %c0_44, %c2_45] : memref<1x4x512xf32, #tpu.memory_space<vmem>>, vector<1x4x384xf32>
    %31 = vector.shape_cast %30 : vector<1x4x384xf32> to vector<4x384xf32>
    %c8_46 = arith.constant 8 : index
    %c768_47 = arith.constant 768 : index
    %32 = vector.load %arg12[%c8_46, %c768_47] : memref<36x1152xf32, #tpu.memory_space<vmem>>, vector<4x384xf32>
    tpu.vector_store %arg12[%c8_46, %c768_47], %31 {strides = array<i32>} : memref<36x1152xf32, #tpu.memory_space<vmem>>, vector<4x384xf32>,
    %c0_48 = arith.constant 0 : index
    %c0_49 = arith.constant 0 : index
    %c2_50 = arith.constant 2 : index
    %33 = vector.load %arg4[%c0_48, %c0_49, %c2_50] : memref<1x4x512xf32, #tpu.memory_space<vmem>>, vector<1x4x384xf32>
    %34 = vector.shape_cast %33 : vector<1x4x384xf32> to vector<4x384xf32>
    %c8_51 = arith.constant 8 : index
    %c0_52 = arith.constant 0 : index
    %35 = vector.load %arg13[%c8_51, %c0_52] : memref<36x384xf32, #tpu.memory_space<vmem>>, vector<4x384xf32>
    tpu.vector_store %arg13[%c8_51, %c0_52], %34 {strides = array<i32>} : memref<36x384xf32, #tpu.memory_space<vmem>>, vector<4x384xf32>,
    %c0_53 = arith.constant 0 : index
    %c0_54 = arith.constant 0 : index
    %c18 = arith.constant 18 : index
    %36 = vector.load %arg1[%c0_53, %c0_54, %c18] : memref<1x4x512xf32, #tpu.memory_space<vmem>>, vector<1x4x384xf32>
    %37 = vector.shape_cast %36 : vector<1x4x384xf32> to vector<4x384xf32>
    %c12 = arith.constant 12 : index
    %c0_55 = arith.constant 0 : index
    %38 = vector.load %arg12[%c12, %c0_55] : memref<36x1152xf32, #tpu.memory_space<vmem>>, vector<4x384xf32>
    tpu.vector_store %arg12[%c12, %c0_55], %37 {strides = array<i32>} : memref<36x1152xf32, #tpu.memory_space<vmem>>, vector<4x384xf32>,
    %c0_56 = arith.constant 0 : index
    %c0_57 = arith.constant 0 : index
    %c18_58 = arith.constant 18 : index
    %39 = vector.load %arg2[%c0_56, %c0_57, %c18_58] : memref<1x4x512xf32, #tpu.memory_space<vmem>>, vector<1x4x384xf32>
    %40 = vector.shape_cast %39 : vector<1x4x384xf32> to vector<4x384xf32>
    %c12_59 = arith.constant 12 : index
    %c384_60 = arith.constant 384 : index
    %41 = vector.load %arg12[%c12_59, %c384_60] : memref<36x1152xf32, #tpu.memory_space<vmem>>, vector<4x384xf32>
    tpu.vector_store %arg12[%c12_59, %c384_60], %40 {strides = array<i32>} : memref<36x1152xf32, #tpu.memory_space<vmem>>, vector<4x384xf32>,
    %c0_61 = arith.constant 0 : index
    %c0_62 = arith.constant 0 : index
    %c18_63 = arith.constant 18 : index
    %42 = vector.load %arg3[%c0_61, %c0_62, %c18_63] : memref<1x4x512xf32, #tpu.memory_space<vmem>>, vector<1x4x384xf32>
    %43 = vector.shape_cast %42 : vector<1x4x384xf32> to vector<4x384xf32>
    %c12_64 = arith.constant 12 : index
    %c768_65 = arith.constant 768 : index
    %44 = vector.load %arg12[%c12_64, %c768_65] : memref<36x1152xf32, #tpu.memory_space<vmem>>, vector<4x384xf32>
    tpu.vector_store %arg12[%c12_64, %c768_65], %43 {strides = array<i32>} : memref<36x1152xf32, #tpu.memory_space<vmem>>, vector<4x384xf32>,
    %c0_66 = arith.constant 0 : index
    %c0_67 = arith.constant 0 : index
    %c18_68 = arith.constant 18 : index
    %45 = vector.load %arg4[%c0_66, %c0_67, %c18_68] : memref<1x4x512xf32, #tpu.memory_space<vmem>>, vector<1x4x384xf32>
    %46 = vector.shape_cast %45 : vector<1x4x384xf32> to vector<4x384xf32>
    %c12_69 = arith.constant 12 : index
    %c0_70 = arith.constant 0 : index
    %47 = vector.load %arg13[%c12_69, %c0_70] : memref<36x384xf32, #tpu.memory_space<vmem>>, vector<4x384xf32>
    tpu.vector_store %arg13[%c12_69, %c0_70], %46 {strides = array<i32>} : memref<36x384xf32, #tpu.memory_space<vmem>>, vector<4x384xf32>,
    %c0_71 = arith.constant 0 : index
    %c0_72 = arith.constant 0 : index
    %c19 = arith.constant 19 : index
    %48 = vector.load %arg1[%c0_71, %c0_72, %c19] : memref<1x4x512xf32, #tpu.memory_space<vmem>>, vector<1x4x384xf32>
    %49 = vector.shape_cast %48 : vector<1x4x384xf32> to vector<4x384xf32>
    %c16 = arith.constant 16 : index
    %c0_73 = arith.constant 0 : index
    %50 = vector.load %arg12[%c16, %c0_73] : memref<36x1152xf32, #tpu.memory_space<vmem>>, vector<4x384xf32>
    tpu.vector_store %arg12[%c16, %c0_73], %49 {strides = array<i32>} : memref<36x1152xf32, #tpu.memory_space<vmem>>, vector<4x384xf32>,
    %c0_74 = arith.constant 0 : index
    %c0_75 = arith.constant 0 : index
    %c19_76 = arith.constant 19 : index
    %51 = vector.load %arg2[%c0_74, %c0_75, %c19_76] : memref<1x4x512xf32, #tpu.memory_space<vmem>>, vector<1x4x384xf32>
    %52 = vector.shape_cast %51 : vector<1x4x384xf32> to vector<4x384xf32>
    %c16_77 = arith.constant 16 : index
    %c384_78 = arith.constant 384 : index
    %53 = vector.load %arg12[%c16_77, %c384_78] : memref<36x1152xf32, #tpu.memory_space<vmem>>, vector<4x384xf32>
    tpu.vector_store %arg12[%c16_77, %c384_78], %52 {strides = array<i32>} : memref<36x1152xf32, #tpu.memory_space<vmem>>, vector<4x384xf32>,
    %c0_79 = arith.constant 0 : index
    %c0_80 = arith.constant 0 : index
    %c19_81 = arith.constant 19 : index
    %54 = vector.load %arg3[%c0_79, %c0_80, %c19_81] : memref<1x4x512xf32, #tpu.memory_space<vmem>>, vector<1x4x384xf32>
    %55 = vector.shape_cast %54 : vector<1x4x384xf32> to vector<4x384xf32>
    %c16_82 = arith.constant 16 : index
    %c768_83 = arith.constant 768 : index
    %56 = vector.load %arg12[%c16_82, %c768_83] : memref<36x1152xf32, #tpu.memory_space<vmem>>, vector<4x384xf32>
    tpu.vector_store %arg12[%c16_82, %c768_83], %55 {strides = array<i32>} : memref<36x1152xf32, #tpu.memory_space<vmem>>, vector<4x384xf32>,
    %c0_84 = arith.constant 0 : index
    %c0_85 = arith.constant 0 : index
    %c19_86 = arith.constant 19 : index
    %57 = vector.load %arg4[%c0_84, %c0_85, %c19_86] : memref<1x4x512xf32, #tpu.memory_space<vmem>>, vector<1x4x384xf32>
    %58 = vector.shape_cast %57 : vector<1x4x384xf32> to vector<4x384xf32>
    %c16_87 = arith.constant 16 : index
    %c0_88 = arith.constant 0 : index
    %59 = vector.load %arg13[%c16_87, %c0_88] : memref<36x384xf32, #tpu.memory_space<vmem>>, vector<4x384xf32>
    tpu.vector_store %arg13[%c16_87, %c0_88], %58 {strides = array<i32>} : memref<36x384xf32, #tpu.memory_space<vmem>>, vector<4x384xf32>,
    %c0_89 = arith.constant 0 : index
    %c0_90 = arith.constant 0 : index
    %c20 = arith.constant 20 : index
    %60 = vector.load %arg1[%c0_89, %c0_90, %c20] : memref<1x4x512xf32, #tpu.memory_space<vmem>>, vector<1x4x384xf32>
    %61 = vector.shape_cast %60 : vector<1x4x384xf32> to vector<4x384xf32>
    %c20_91 = arith.constant 20 : index
    %c0_92 = arith.constant 0 : index
    %62 = vector.load %arg12[%c20_91, %c0_92] : memref<36x1152xf32, #tpu.memory_space<vmem>>, vector<4x384xf32>
    tpu.vector_store %arg12[%c20_91, %c0_92], %61 {strides = array<i32>} : memref<36x1152xf32, #tpu.memory_space<vmem>>, vector<4x384xf32>,
    %c0_93 = arith.constant 0 : index
    %c0_94 = arith.constant 0 : index
    %c20_95 = arith.constant 20 : index
    %63 = vector.load %arg2[%c0_93, %c0_94, %c20_95] : memref<1x4x512xf32, #tpu.memory_space<vmem>>, vector<1x4x384xf32>
    %64 = vector.shape_cast %63 : vector<1x4x384xf32> to vector<4x384xf32>
    %c20_96 = arith.constant 20 : index
    %c384_97 = arith.constant 384 : index
    %65 = vector.load %arg12[%c20_96, %c384_97] : memref<36x1152xf32, #tpu.memory_space<vmem>>, vector<4x384xf32>
    tpu.vector_store %arg12[%c20_96, %c384_97], %64 {strides = array<i32>} : memref<36x1152xf32, #tpu.memory_space<vmem>>, vector<4x384xf32>,
    %c0_98 = arith.constant 0 : index
    %c0_99 = arith.constant 0 : index
    %c20_100 = arith.constant 20 : index
    %66 = vector.load %arg3[%c0_98, %c0_99, %c20_100] : memref<1x4x512xf32, #tpu.memory_space<vmem>>, vector<1x4x384xf32>
    %67 = vector.shape_cast %66 : vector<1x4x384xf32> to vector<4x384xf32>
    %c20_101 = arith.constant 20 : index
    %c768_102 = arith.constant 768 : index
    %68 = vector.load %arg12[%c20_101, %c768_102] : memref<36x1152xf32, #tpu.memory_space<vmem>>, vector<4x384xf32>
    tpu.vector_store %arg12[%c20_101, %c768_102], %67 {strides = array<i32>} : memref<36x1152xf32, #tpu.memory_space<vmem>>, vector<4x384xf32>,
    %c0_103 = arith.constant 0 : index
    %c0_104 = arith.constant 0 : index
    %c20_105 = arith.constant 20 : index
    %69 = vector.load %arg4[%c0_103, %c0_104, %c20_105] : memref<1x4x512xf32, #tpu.memory_space<vmem>>, vector<1x4x384xf32>
    %70 = vector.shape_cast %69 : vector<1x4x384xf32> to vector<4x384xf32>
    %c20_106 = arith.constant 20 : index
    %c0_107 = arith.constant 0 : index
    %71 = vector.load %arg13[%c20_106, %c0_107] : memref<36x384xf32, #tpu.memory_space<vmem>>, vector<4x384xf32>
    tpu.vector_store %arg13[%c20_106, %c0_107], %70 {strides = array<i32>} : memref<36x384xf32, #tpu.memory_space<vmem>>, vector<4x384xf32>,
    %c0_108 = arith.constant 0 : index
    %c0_109 = arith.constant 0 : index
    %c36 = arith.constant 36 : index
    %72 = vector.load %arg1[%c0_108, %c0_109, %c36] : memref<1x4x512xf32, #tpu.memory_space<vmem>>, vector<1x4x384xf32>
    %73 = vector.shape_cast %72 : vector<1x4x384xf32> to vector<4x384xf32>
    %c24 = arith.constant 24 : index
    %c0_110 = arith.constant 0 : index
    %74 = vector.load %arg12[%c24, %c0_110] : memref<36x1152xf32, #tpu.memory_space<vmem>>, vector<4x384xf32>
    tpu.vector_store %arg12[%c24, %c0_110], %73 {strides = array<i32>} : memref<36x1152xf32, #tpu.memory_space<vmem>>, vector<4x384xf32>,
    %c0_111 = arith.constant 0 : index
    %c0_112 = arith.constant 0 : index
    %c36_113 = arith.constant 36 : index
    %75 = vector.load %arg2[%c0_111, %c0_112, %c36_113] : memref<1x4x512xf32, #tpu.memory_space<vmem>>, vector<1x4x384xf32>
    %76 = vector.shape_cast %75 : vector<1x4x384xf32> to vector<4x384xf32>
    %c24_114 = arith.constant 24 : index
    %c384_115 = arith.constant 384 : index
    %77 = vector.load %arg12[%c24_114, %c384_115] : memref<36x1152xf32, #tpu.memory_space<vmem>>, vector<4x384xf32>
    tpu.vector_store %arg12[%c24_114, %c384_115], %76 {strides = array<i32>} : memref<36x1152xf32, #tpu.memory_space<vmem>>, vector<4x384xf32>,
    %c0_116 = arith.constant 0 : index
    %c0_117 = arith.constant 0 : index
    %c36_118 = arith.constant 36 : index
    %78 = vector.load %arg3[%c0_116, %c0_117, %c36_118] : memref<1x4x512xf32, #tpu.memory_space<vmem>>, vector<1x4x384xf32>
    %79 = vector.shape_cast %78 : vector<1x4x384xf32> to vector<4x384xf32>
    %c24_119 = arith.constant 24 : index
    %c768_120 = arith.constant 768 : index
    %80 = vector.load %arg12[%c24_119, %c768_120] : memref<36x1152xf32, #tpu.memory_space<vmem>>, vector<4x384xf32>
    tpu.vector_store %arg12[%c24_119, %c768_120], %79 {strides = array<i32>} : memref<36x1152xf32, #tpu.memory_space<vmem>>, vector<4x384xf32>,
    %c0_121 = arith.constant 0 : index
    %c0_122 = arith.constant 0 : index
    %c36_123 = arith.constant 36 : index
    %81 = vector.load %arg4[%c0_121, %c0_122, %c36_123] : memref<1x4x512xf32, #tpu.memory_space<vmem>>, vector<1x4x384xf32>
    %82 = vector.shape_cast %81 : vector<1x4x384xf32> to vector<4x384xf32>
    %c24_124 = arith.constant 24 : index
    %c0_125 = arith.constant 0 : index
    %83 = vector.load %arg13[%c24_124, %c0_125] : memref<36x384xf32, #tpu.memory_space<vmem>>, vector<4x384xf32>
    tpu.vector_store %arg13[%c24_124, %c0_125], %82 {strides = array<i32>} : memref<36x384xf32, #tpu.memory_space<vmem>>, vector<4x384xf32>,
    %c0_126 = arith.constant 0 : index
    %c0_127 = arith.constant 0 : index
    %c37 = arith.constant 37 : index
    %84 = vector.load %arg1[%c0_126, %c0_127, %c37] : memref<1x4x512xf32, #tpu.memory_space<vmem>>, vector<1x4x384xf32>
    %85 = vector.shape_cast %84 : vector<1x4x384xf32> to vector<4x384xf32>
    %c28 = arith.constant 28 : index
    %c0_128 = arith.constant 0 : index
    %86 = vector.load %arg12[%c28, %c0_128] : memref<36x1152xf32, #tpu.memory_space<vmem>>, vector<4x384xf32>
    tpu.vector_store %arg12[%c28, %c0_128], %85 {strides = array<i32>} : memref<36x1152xf32, #tpu.memory_space<vmem>>, vector<4x384xf32>,
    %c0_129 = arith.constant 0 : index
    %c0_130 = arith.constant 0 : index
    %c37_131 = arith.constant 37 : index
    %87 = vector.load %arg2[%c0_129, %c0_130, %c37_131] : memref<1x4x512xf32, #tpu.memory_space<vmem>>, vector<1x4x384xf32>
    %88 = vector.shape_cast %87 : vector<1x4x384xf32> to vector<4x384xf32>
    %c28_132 = arith.constant 28 : index
    %c384_133 = arith.constant 384 : index
    %89 = vector.load %arg12[%c28_132, %c384_133] : memref<36x1152xf32, #tpu.memory_space<vmem>>, vector<4x384xf32>
    tpu.vector_store %arg12[%c28_132, %c384_133], %88 {strides = array<i32>} : memref<36x1152xf32, #tpu.memory_space<vmem>>, vector<4x384xf32>,
    %c0_134 = arith.constant 0 : index
    %c0_135 = arith.constant 0 : index
    %c37_136 = arith.constant 37 : index
    %90 = vector.load %arg3[%c0_134, %c0_135, %c37_136] : memref<1x4x512xf32, #tpu.memory_space<vmem>>, vector<1x4x384xf32>
    %91 = vector.shape_cast %90 : vector<1x4x384xf32> to vector<4x384xf32>
    %c28_137 = arith.constant 28 : index
    %c768_138 = arith.constant 768 : index
    %92 = vector.load %arg12[%c28_137, %c768_138] : memref<36x1152xf32, #tpu.memory_space<vmem>>, vector<4x384xf32>
    tpu.vector_store %arg12[%c28_137, %c768_138], %91 {strides = array<i32>} : memref<36x1152xf32, #tpu.memory_space<vmem>>, vector<4x384xf32>,
    %c0_139 = arith.constant 0 : index
    %c0_140 = arith.constant 0 : index
    %c37_141 = arith.constant 37 : index
    %93 = vector.load %arg4[%c0_139, %c0_140, %c37_141] : memref<1x4x512xf32, #tpu.memory_space<vmem>>, vector<1x4x384xf32>
    %94 = vector.shape_cast %93 : vector<1x4x384xf32> to vector<4x384xf32>
    %c28_142 = arith.constant 28 : index
    %c0_143 = arith.constant 0 : index
    %95 = vector.load %arg13[%c28_142, %c0_143] : memref<36x384xf32, #tpu.memory_space<vmem>>, vector<4x384xf32>
    tpu.vector_store %arg13[%c28_142, %c0_143], %94 {strides = array<i32>} : memref<36x384xf32, #tpu.memory_space<vmem>>, vector<4x384xf32>,
    %c0_144 = arith.constant 0 : index
    %c0_145 = arith.constant 0 : index
    %c38 = arith.constant 38 : index
    %96 = vector.load %arg1[%c0_144, %c0_145, %c38] : memref<1x4x512xf32, #tpu.memory_space<vmem>>, vector<1x4x384xf32>
    %97 = vector.shape_cast %96 : vector<1x4x384xf32> to vector<4x384xf32>
    %c32 = arith.constant 32 : index
    %c0_146 = arith.constant 0 : index
    %98 = vector.load %arg12[%c32, %c0_146] : memref<36x1152xf32, #tpu.memory_space<vmem>>, vector<4x384xf32>
    tpu.vector_store %arg12[%c32, %c0_146], %97 {strides = array<i32>} : memref<36x1152xf32, #tpu.memory_space<vmem>>, vector<4x384xf32>,
    %c0_147 = arith.constant 0 : index
    %c0_148 = arith.constant 0 : index
    %c38_149 = arith.constant 38 : index
    %99 = vector.load %arg2[%c0_147, %c0_148, %c38_149] : memref<1x4x512xf32, #tpu.memory_space<vmem>>, vector<1x4x384xf32>
    %100 = vector.shape_cast %99 : vector<1x4x384xf32> to vector<4x384xf32>
    %c32_150 = arith.constant 32 : index
    %c384_151 = arith.constant 384 : index
    %101 = vector.load %arg12[%c32_150, %c384_151] : memref<36x1152xf32, #tpu.memory_space<vmem>>, vector<4x384xf32>
    tpu.vector_store %arg12[%c32_150, %c384_151], %100 {strides = array<i32>} : memref<36x1152xf32, #tpu.memory_space<vmem>>, vector<4x384xf32>,
    %c0_152 = arith.constant 0 : index
    %c0_153 = arith.constant 0 : index
    %c38_154 = arith.constant 38 : index
    %102 = vector.load %arg3[%c0_152, %c0_153, %c38_154] : memref<1x4x512xf32, #tpu.memory_space<vmem>>, vector<1x4x384xf32>
    %103 = vector.shape_cast %102 : vector<1x4x384xf32> to vector<4x384xf32>
    %c32_155 = arith.constant 32 : index
    %c768_156 = arith.constant 768 : index
    %104 = vector.load %arg12[%c32_155, %c768_156] : memref<36x1152xf32, #tpu.memory_space<vmem>>, vector<4x384xf32>
    tpu.vector_store %arg12[%c32_155, %c768_156], %103 {strides = array<i32>} : memref<36x1152xf32, #tpu.memory_space<vmem>>, vector<4x384xf32>,
    %c0_157 = arith.constant 0 : index
    %c0_158 = arith.constant 0 : index
    %c38_159 = arith.constant 38 : index
    %105 = vector.load %arg4[%c0_157, %c0_158, %c38_159] : memref<1x4x512xf32, #tpu.memory_space<vmem>>, vector<1x4x384xf32>
    %106 = vector.shape_cast %105 : vector<1x4x384xf32> to vector<4x384xf32>
    %c32_160 = arith.constant 32 : index
    %c0_161 = arith.constant 0 : index
    %107 = vector.load %arg13[%c32_160, %c0_161] : memref<36x384xf32, #tpu.memory_space<vmem>>, vector<4x384xf32>
    tpu.vector_store %arg13[%c32_160, %c0_161], %106 {strides = array<i32>} : memref<36x384xf32, #tpu.memory_space<vmem>>, vector<4x384xf32>,
    %c0_162 = arith.constant 0 : index
    %c0_163 = arith.constant 0 : index
    %108 = vector.load %arg6[%c0_162, %c0_163] : memref<4x36xf32, #tpu.memory_space<vmem>>, vector<4x36xf32>
    %c0_164 = arith.constant 0 : index
    %c0_165 = arith.constant 0 : index
    %109 = vector.load %arg12[%c0_164, %c0_165] : memref<36x1152xf32, #tpu.memory_space<vmem>>, vector<36x1152xf32>
    %cst = arith.constant dense<0.000000e+00> : vector<4x1152xf32>
    %110 = tpu.matmul %108, %109, %cst {dimension_numbers = #tpu.dot_dimension_numbers<[1], [0], [0], [1], [0, 0, 1, 1], [], []>} : vector<4x36xf32>, vector<36x1152xf32>, vector<4x1152xf32> -> vector<4x1152xf32>
    %c0_166 = arith.constant 0 : index
    %c0_167 = arith.constant 0 : index
    %111 = vector.load %arg7[%c0_166, %c0_167] : memref<4x36xf32, #tpu.memory_space<vmem>>, vector<4x36xf32>
    %c0_168 = arith.constant 0 : index
    %c0_169 = arith.constant 0 : index
    %112 = vector.load %arg13[%c0_168, %c0_169] : memref<36x384xf32, #tpu.memory_space<vmem>>, vector<36x384xf32>
    %cst_170 = arith.constant dense<0.000000e+00> : vector<4x384xf32>
    %113 = tpu.matmul %111, %112, %cst_170 {dimension_numbers = #tpu.dot_dimension_numbers<[1], [0], [0], [1], [0, 0, 1, 1], [], []>} : vector<4x36xf32>, vector<36x384xf32>, vector<4x384xf32> -> vector<4x384xf32>
    %c0_171 = arith.constant 0 : index
    %c0_172 = arith.constant 0 : index
    %114 = vector.load %arg9[%c0_171, %c0_172] : memref<4x1xf32, #tpu.memory_space<vmem>>, vector<4x1xf32>
    %115 = vector.broadcast %114 : vector<4x1xf32> to vector<4x384xf32>
    %116 = arith.addf %113, %115 : vector<4x384xf32>
    %c0_173 = arith.constant 0 : index
    %c0_174 = arith.constant 0 : index
    %117 = vector.load %arg5[%c0_173, %c0_174] : memref<1x384xf32, #tpu.memory_space<vmem>>, vector<1x384xf32>
    %118 = vector.extract_strided_slice %110 {offsets = [0, 0], sizes = [4, 384], strides = [1, 1]} : vector<4x1152xf32> to vector<4x384xf32>
    %119 = arith.addf %118, %116 : vector<4x384xf32>
    %cst_175 = arith.constant 0.000000e+00 : f32
    %120 = vector.broadcast %cst_175 : f32 to vector<4x384xf32>
    %121 = arith.maximumf %119, %120 : vector<4x384xf32>
    %122 = vector.broadcast %117 : vector<1x384xf32> to vector<4x384xf32>
    %123 = arith.mulf %121, %122 : vector<4x384xf32>
    %124 = vector.extract_strided_slice %110 {offsets = [0, 384], sizes = [4, 384], strides = [1, 1]} : vector<4x1152xf32> to vector<4x384xf32>
    %125 = arith.addf %124, %116 : vector<4x384xf32>
    %cst_176 = arith.constant 0.000000e+00 : f32
    %126 = vector.broadcast %cst_176 : f32 to vector<4x384xf32>
    %127 = arith.maximumf %125, %126 : vector<4x384xf32>
    %128 = vector.broadcast %117 : vector<1x384xf32> to vector<4x384xf32>
    %129 = arith.mulf %127, %128 : vector<4x384xf32>
    %130 = vector.extract_strided_slice %110 {offsets = [0, 768], sizes = [4, 384], strides = [1, 1]} : vector<4x1152xf32> to vector<4x384xf32>
    %131 = arith.addf %130, %116 : vector<4x384xf32>
    %cst_177 = arith.constant 0.000000e+00 : f32
    %132 = vector.broadcast %cst_177 : f32 to vector<4x384xf32>
    %133 = arith.maximumf %131, %132 : vector<4x384xf32>
    %134 = vector.broadcast %117 : vector<1x384xf32> to vector<4x384xf32>
    %135 = arith.mulf %133, %134 : vector<4x384xf32>
    %cst_178 = arith.constant 0.000000e+00 : f32
    %136 = vector.broadcast %cst_178 : f32 to vector<12x512xf32>
    %c0_179 = arith.constant 0 : index
    %c0_180 = arith.constant 0 : index
    %137 = vector.load %arg14[%c0_179, %c0_180] : memref<12x512xf32, #tpu.memory_space<vmem>>, vector<12x512xf32>
    tpu.vector_store %arg14[%c0_179, %c0_180], %136 {strides = array<i32>} : memref<12x512xf32, #tpu.memory_space<vmem>>, vector<12x512xf32>,
    %c0_181 = arith.constant 0 : index
    %c19_182 = arith.constant 19 : index
    %138 = vector.load %arg14[%c0_181, %c19_182] : memref<12x512xf32, #tpu.memory_space<vmem>>, vector<4x384xf32>
    tpu.vector_store %arg14[%c0_181, %c19_182], %123 {strides = array<i32>} : memref<12x512xf32, #tpu.memory_space<vmem>>, vector<4x384xf32>,
    %c4_183 = arith.constant 4 : index
    %c19_184 = arith.constant 19 : index
    %139 = vector.load %arg14[%c4_183, %c19_184] : memref<12x512xf32, #tpu.memory_space<vmem>>, vector<4x384xf32>
    tpu.vector_store %arg14[%c4_183, %c19_184], %129 {strides = array<i32>} : memref<12x512xf32, #tpu.memory_space<vmem>>, vector<4x384xf32>,
    %c8_185 = arith.constant 8 : index
    %c19_186 = arith.constant 19 : index
    %140 = vector.load %arg14[%c8_185, %c19_186] : memref<12x512xf32, #tpu.memory_space<vmem>>, vector<4x384xf32>
    tpu.vector_store %arg14[%c8_185, %c19_186], %135 {strides = array<i32>} : memref<12x512xf32, #tpu.memory_space<vmem>>, vector<4x384xf32>,
    %c0_187 = arith.constant 0 : index
    %c0_188 = arith.constant 0 : index
    %141 = vector.load %arg14[%c0_187, %c0_188] : memref<12x512xf32, #tpu.memory_space<vmem>>, vector<12x384xf32>
    %c0_189 = arith.constant 0 : index
    %c0_190 = arith.constant 0 : index
    %142 = vector.load %arg15[%c0_189, %c0_190] : memref<108x384xf32, #tpu.memory_space<vmem>>, vector<12x384xf32>
    tpu.vector_store %arg15[%c0_189, %c0_190], %141 {strides = array<i32>} : memref<108x384xf32, #tpu.memory_space<vmem>>, vector<12x384xf32>,
    %c0_191 = arith.constant 0 : index
    %c1_192 = arith.constant 1 : index
    %143 = vector.load %arg14[%c0_191, %c1_192] : memref<12x512xf32, #tpu.memory_space<vmem>>, vector<12x384xf32>
    %c12_193 = arith.constant 12 : index
    %c0_194 = arith.constant 0 : index
    %144 = vector.load %arg15[%c12_193, %c0_194] : memref<108x384xf32, #tpu.memory_space<vmem>>, vector<12x384xf32>
    tpu.vector_store %arg15[%c12_193, %c0_194], %143 {strides = array<i32>} : memref<108x384xf32, #tpu.memory_space<vmem>>, vector<12x384xf32>,
    %c0_195 = arith.constant 0 : index
    %c2_196 = arith.constant 2 : index
    %145 = vector.load %arg14[%c0_195, %c2_196] : memref<12x512xf32, #tpu.memory_space<vmem>>, vector<12x384xf32>
    %c24_197 = arith.constant 24 : index
    %c0_198 = arith.constant 0 : index
    %146 = vector.load %arg15[%c24_197, %c0_198] : memref<108x384xf32, #tpu.memory_space<vmem>>, vector<12x384xf32>
    tpu.vector_store %arg15[%c24_197, %c0_198], %145 {strides = array<i32>} : memref<108x384xf32, #tpu.memory_space<vmem>>, vector<12x384xf32>,
    %c0_199 = arith.constant 0 : index
    %c18_200 = arith.constant 18 : index
    %147 = vector.load %arg14[%c0_199, %c18_200] : memref<12x512xf32, #tpu.memory_space<vmem>>, vector<12x384xf32>
    %c36_201 = arith.constant 36 : index
    %c0_202 = arith.constant 0 : index
    %148 = vector.load %arg15[%c36_201, %c0_202] : memref<108x384xf32, #tpu.memory_space<vmem>>, vector<12x384xf32>
    tpu.vector_store %arg15[%c36_201, %c0_202], %147 {strides = array<i32>} : memref<108x384xf32, #tpu.memory_space<vmem>>, vector<12x384xf32>,
    %c0_203 = arith.constant 0 : index
    %c19_204 = arith.constant 19 : index
    %149 = vector.load %arg14[%c0_203, %c19_204] : memref<12x512xf32, #tpu.memory_space<vmem>>, vector<12x384xf32>
    %c48 = arith.constant 48 : index
    %c0_205 = arith.constant 0 : index
    %150 = vector.load %arg15[%c48, %c0_205] : memref<108x384xf32, #tpu.memory_space<vmem>>, vector<12x384xf32>
    tpu.vector_store %arg15[%c48, %c0_205], %149 {strides = array<i32>} : memref<108x384xf32, #tpu.memory_space<vmem>>, vector<12x384xf32>,
    %c0_206 = arith.constant 0 : index
    %c20_207 = arith.constant 20 : index
    %151 = vector.load %arg14[%c0_206, %c20_207] : memref<12x512xf32, #tpu.memory_space<vmem>>, vector<12x384xf32>
    %c60 = arith.constant 60 : index
    %c0_208 = arith.constant 0 : index
    %152 = vector.load %arg15[%c60, %c0_208] : memref<108x384xf32, #tpu.memory_space<vmem>>, vector<12x384xf32>
    tpu.vector_store %arg15[%c60, %c0_208], %151 {strides = array<i32>} : memref<108x384xf32, #tpu.memory_space<vmem>>, vector<12x384xf32>,
    %c0_209 = arith.constant 0 : index
    %c36_210 = arith.constant 36 : index
    %153 = vector.load %arg14[%c0_209, %c36_210] : memref<12x512xf32, #tpu.memory_space<vmem>>, vector<12x384xf32>
    %c72 = arith.constant 72 : index
    %c0_211 = arith.constant 0 : index
    %154 = vector.load %arg15[%c72, %c0_211] : memref<108x384xf32, #tpu.memory_space<vmem>>, vector<12x384xf32>
    tpu.vector_store %arg15[%c72, %c0_211], %153 {strides = array<i32>} : memref<108x384xf32, #tpu.memory_space<vmem>>, vector<12x384xf32>,
    %c0_212 = arith.constant 0 : index
    %c37_213 = arith.constant 37 : index
    %155 = vector.load %arg14[%c0_212, %c37_213] : memref<12x512xf32, #tpu.memory_space<vmem>>, vector<12x384xf32>
    %c84 = arith.constant 84 : index
    %c0_214 = arith.constant 0 : index
    %156 = vector.load %arg15[%c84, %c0_214] : memref<108x384xf32, #tpu.memory_space<vmem>>, vector<12x384xf32>
    tpu.vector_store %arg15[%c84, %c0_214], %155 {strides = array<i32>} : memref<108x384xf32, #tpu.memory_space<vmem>>, vector<12x384xf32>,
    %c0_215 = arith.constant 0 : index
    %c38_216 = arith.constant 38 : index
    %157 = vector.load %arg14[%c0_215, %c38_216] : memref<12x512xf32, #tpu.memory_space<vmem>>, vector<12x384xf32>
    %c96 = arith.constant 96 : index
    %c0_217 = arith.constant 0 : index
    %158 = vector.load %arg15[%c96, %c0_217] : memref<108x384xf32, #tpu.memory_space<vmem>>, vector<12x384xf32>
    tpu.vector_store %arg15[%c96, %c0_217], %157 {strides = array<i32>} : memref<108x384xf32, #tpu.memory_space<vmem>>, vector<12x384xf32>,
    %c0_218 = arith.constant 0 : index
    %c0_219 = arith.constant 0 : index
    %159 = vector.load %arg8[%c0_218, %c0_219] : memref<4x108xf32, #tpu.memory_space<vmem>>, vector<4x108xf32>
    %c0_220 = arith.constant 0 : index
    %c0_221 = arith.constant 0 : index
    %160 = vector.load %arg15[%c0_220, %c0_221] : memref<108x384xf32, #tpu.memory_space<vmem>>, vector<108x384xf32>
    %cst_222 = arith.constant dense<0.000000e+00> : vector<4x384xf32>
    %161 = tpu.matmul %159, %160, %cst_222 {dimension_numbers = #tpu.dot_dimension_numbers<[1], [0], [0], [1], [0, 0, 1, 1], [], []>} : vector<4x108xf32>, vector<108x384xf32>, vector<4x384xf32> -> vector<4x384xf32>
    %c0_223 = arith.constant 0 : index
    %c0_224 = arith.constant 0 : index
    %162 = vector.load %arg10[%c0_223, %c0_224] : memref<4x1xf32, #tpu.memory_space<vmem>>, vector<4x1xf32>
    %163 = vector.broadcast %162 : vector<4x1xf32> to vector<4x384xf32>
    %164 = arith.addf %161, %163 : vector<4x384xf32>
    %c0_225 = arith.constant 0 : index
    %c0_226 = arith.constant 0 : index
    %c19_227 = arith.constant 19 : index
    %165 = vector.load %arg4[%c0_225, %c0_226, %c19_227] : memref<1x4x512xf32, #tpu.memory_space<vmem>>, vector<1x4x384xf32>
    %166 = vector.shape_cast %165 : vector<1x4x384xf32> to vector<4x384xf32>
    %167 = arith.addf %164, %166 : vector<4x384xf32>
    %168 = tpu.concatenate %123, %129, %135, %167 in 0 : vector<4x384xf32>, vector<4x384xf32>, vector<4x384xf32>, vector<4x384xf32> -> vector<16x384xf32>
    %c0_228 = arith.constant 0 : index
    %c0_229 = arith.constant 0 : index
    %c0_230 = arith.constant 0 : index
    %169 = vector.load %arg11[%c0_228, %c0_229, %c0_230] : memref<1x16x384xf32, #tpu.memory_space<vmem>>, vector<1x16x384xf32>
    %170 = vector.shape_cast %169 : vector<1x16x384xf32> to vector<16x384xf32>
    %171 = vector.shape_cast %168 : vector<16x384xf32> to vector<1x16x384xf32>
    tpu.vector_store %arg11[%c0_228, %c0_229, %c0_230], %171 {strides = array<i32>} : memref<1x16x384xf32, #tpu.memory_space<vmem>>, vector<1x16x384xf32>,
    return
  }
  func.func @transform_0(%arg0: i32) -> (i32, i32, i32) {
    %c0_i32 = arith.constant 0 : i32
    %c0_i32_0 = arith.constant 0 : i32
    %c0_i32_1 = arith.constant 0 : i32
    return %arg0, %c0_i32, %c0_i32_0 : i32, i32, i32
  }
  func.func @transform_1(%arg0: i32) -> (i32, i32, i32) {
    %c0_i32 = arith.constant 0 : i32
    %c0_i32_0 = arith.constant 0 : i32
    %c0_i32_1 = arith.constant 0 : i32
    return %arg0, %c0_i32, %c0_i32_0 : i32, i32, i32
  }
  func.func @transform_2(%arg0: i32) -> (i32, i32, i32) {
    %c0_i32 = arith.constant 0 : i32
    %c0_i32_0 = arith.constant 0 : i32
    %c0_i32_1 = arith.constant 0 : i32
    return %arg0, %c0_i32, %c0_i32_0 : i32, i32, i32
  }
  func.func @transform_3(%arg0: i32) -> (i32, i32, i32) {
    %c0_i32 = arith.constant 0 : i32
    %c0_i32_0 = arith.constant 0 : i32
    %c0_i32_1 = arith.constant 0 : i32
    return %arg0, %c0_i32, %c0_i32_0 : i32, i32, i32
  }
  func.func @transform_4(%arg0: i32) -> (i32, i32) {
    %c0_i32 = arith.constant 0 : i32
    %c0_i32_0 = arith.constant 0 : i32
    %c0_i32_1 = arith.constant 0 : i32
    return %c0_i32, %c0_i32_0 : i32, i32
  }
  func.func @transform_5(%arg0: i32) -> (i32, i32) {
    %c0_i32 = arith.constant 0 : i32
    %c0_i32_0 = arith.constant 0 : i32
    %c0_i32_1 = arith.constant 0 : i32
    return %c0_i32, %c0_i32_0 : i32, i32
  }
  func.func @transform_6(%arg0: i32) -> (i32, i32) {
    %c0_i32 = arith.constant 0 : i32
    %c0_i32_0 = arith.constant 0 : i32
    %c0_i32_1 = arith.constant 0 : i32
    return %c0_i32, %c0_i32_0 : i32, i32
  }
  func.func @transform_7(%arg0: i32) -> (i32, i32) {
    %c0_i32 = arith.constant 0 : i32
    %c0_i32_0 = arith.constant 0 : i32
    %c0_i32_1 = arith.constant 0 : i32
    return %c0_i32, %c0_i32_0 : i32, i32
  }
  func.func @transform_8(%arg0: i32) -> (i32, i32) {
    %c0_i32 = arith.constant 0 : i32
    %c0_i32_0 = arith.constant 0 : i32
    %c0_i32_1 = arith.constant 0 : i32
    return %c0_i32, %c0_i32_0 : i32, i32
  }
  func.func @transform_9(%arg0: i32) -> (i32, i32) {
    %c0_i32 = arith.constant 0 : i32
    %c0_i32_0 = arith.constant 0 : i32
    %c0_i32_1 = arith.constant 0 : i32
    return %c0_i32, %c0_i32_0 : i32, i32
  }
  func.func @transform_10(%arg0: i32) -> (i32, i32, i32) {
    %c0_i32 = arith.constant 0 : i32
    %c0_i32_0 = arith.constant 0 : i32
    %c0_i32_1 = arith.constant 0 : i32
    return %arg0, %c0_i32, %c0_i32_0 : i32, i32, i32
  }
}

</mosaic_0001>

<bundles_post_ra>
// kernel: bin_res_block_forward.1
= control target key start
LH: loop header
LB: loop body
LE: loop exit
PB: predicated region body
PF: predicated region fallthrough
CT: control target
= control target key end

     0   :  { %s2965_s13 = smov 0   ;;  %s3804_s0 = inlined_call_operand.vmem [shape: f32[2,4,512], index: 0, kind: input, shape index: {}]   ;;  %s3805_s1 = inlined_call_operand.vmem [shape: f32[2,4,512], index: 1, kind: input, shape index: {}]   ;;  %s3806_s2 = inlined_call_operand.vmem [shape: f32[2,4,512], index: 2, kind: input, shape index: {}]   ;;  %s3807_s3 = inlined_call_operand.vmem [shape: f32[2,4,512], index: 3, kind: input, shape index: {}]   ;;  %s3808_s4 = inlined_call_operand.vmem [shape: f32[1,384], index: 4, kind: input, shape index: {}]   ;;  %s3809_s5 = inlined_call_operand.vmem [shape: f32[4,36], index: 5, kind: input, shape index: {}]   ;;  %s3810_s6 = inlined_call_operand.vmem [shape: f32[4,36], index: 6, kind: input, shape index: {}]   ;;  %s3811_s7 = inlined_call_operand.vmem [shape: f32[4,108], index: 7, kind: input, shape index: {}]   ;;  %s3812_s8 = inlined_call_operand.vmem [shape: f32[4,1], index: 8, kind: input, shape index: {}]   ;;  %s3813_s9 = inlined_call_operand.vmem [shape: f32[4,1], index: 9, kind: input, shape index: {}]   ;;  %s3814_s10 = inlined_call_operand.vmem [shape: f32[2,16,384], index: 10, kind: output, shape index: {}]  }
   0x1 LB: > { %s2720_s14 = sadd.s32 4294967295, %s2896_s13   ;;  %p2724_p0 = scmp.ge.s32.totalorder %s2896_s13, 1  ;;  %s2896_s13 = sphi %s2965_s13, %s20_s13  }
   0x2   : > { %p342_p1 = scmp.lt.s32.totalorder %s2896_s13, 3 }
   0x4   : > { %p343_p2 = pnand %p2724_p0, %p342_p1 }
   0x5   : > { %p395_p3 = scmp.lt.s32.totalorder (!%p343_p2), %s2720_s14, 1  ;;  %s2898_s19 = smov (!%p343_p2), 90  }
   0x6   : > { %346 = sbr.rel (%p343_p2) target bundleno = 1165 (0x48d), region = 60  ;;  %s2899_s26 = smov (!%p343_p2), 91  }
   0x7   : > { %s2900_s27 = smov (!%p343_p2), 92   ;;  %s2901_s28 = smov (!%p343_p2), 109  }
   0x8   : > { %s2902_s29 = smov (!%p343_p2), 108   ;;  %s2903_s30 = smov (!%p343_p2), 126  }
   0x9   : > { %s2904_s11 = smov (!%p343_p2), 110   ;;  %s2905_s12 = smov (!%p343_p2), 127  }
   0xb   : > { %s3816_s14 = smov (!%p395_p3, %s2720_s14), 1  ;;  %v2906_v15 = vmov 0.0   ;;  %vm1117_vm0 = vcmask 736256   ;;  %vm931_vm1 = vcmask 752640   ;;  %vm1024_vm2 = vcmask 744448  }
   0xc   : > { %s2976_s15 = sshll.u32 %s3816_s14, 4  ;;  %1338 = vmatprep.mubr.f32.mxu0 %v2906_v15  ;;  %1847 = vst [vmem:[#allocation4] sm:$0xff] %v2906_v15  ;;  %1848 = vst [vmem:[#allocation4 + $0x8] sm:$0xff] %v2906_v15  ;;  %1409 = vmatprep.mubr.f32.mxu1 %v2906_v15  ;;  %vm1246_vm3 = vcmask 1043456   ;;  %vm745_vm4 = vcmask 891904   ;;  %vm838_vm5 = vcmask 883712  }
   0xd   : > { %s2982_s18 = scalar_lea.vmem %s3804_s0, %s2976_s15  ;;  %s2995_s22 = scalar_lea.vmem %s3805_s1, %s2976_s15  ;;  %1849 = vst [vmem:[#allocation4 + $0x10] sm:$0xff] %v2906_v15  ;;  %1850 = vst [vmem:[#allocation4 + $0x18] sm:$0xff] %v2906_v15  ;;  %vm559_vm6 = vcmask 1031168   ;;  %vm652_vm7 = vcmask 900096   ;;  %vm466_vm8 = vcmask 1039360   ;;  %vm1242_vm9 = vcmask 293888  }
   0xe   : > { %v2985_v0 = vld [vmem:[%s2982_s18 + $0x8] sm:$0xff]  ;;  %v1103_v1 = vld [vmem:[%s2982_s18] sm:$0xff]  ;;  %s3001_s25 = scalar_lea.vmem %s3806_s2, %s2976_s15  ;;  %s3063_s20 = scalar_lea.vmem %s3807_s3, %s2976_s15  ;;  %1851 = vst [vmem:[#allocation4 + $0x20] sm:$0xf] %v2906_v15  ;;  %1852 = vst [vmem:[#allocation4 + $0x28] sm:$0xf] %v2906_v15 }
   0xf   : > { %1113 = vrot.lane.b32.xlu0 %v2985_v0, %s2898_s19  ;;  %1109 = vrot.lane.b32.xlu1 %v1103_v1, %s2898_s19  ;;  %v1107_v2 = vcombine.high %v1103_v1, %v1103_v1  ;;  %425 = vst [vmem:[#allocation2 + $0xb0] sm:$0xf] %v1103_v1  ;;  %v3004_v3 = vld [vmem:[%s2995_s22] sm:$0xff]  ;;  %v1015_v7 = vcombine.low %v2985_v0, %v2985_v0  ;;  %v3069_v11 = vld [vmem:[%s2995_s22 + $0x8] sm:$0xff]  ;;  %1853 = vst [vmem:[#allocation4 + $0x30] sm:$0xf] %v2906_v15 }
  0x10   : > { %v3007_v4 = vld [vmem:[%s3001_s25] sm:$0xff]  ;;  %v3011_v5 = vcombine.high %v3004_v3, %v3004_v3  ;;  %433 = vst [vmem:[#allocation2 + $0x48] sm:$0xf] %v3004_v3  ;;  %v1014_v8 = vcombine.low %v1103_v1, %v1103_v1  ;;  %v1108_v9 = vcombine.high %v2985_v0, %v2985_v0  ;;  %v1038_v10 = vcombine.low %v3004_v3, %v3004_v3  ;;  %v421_v17 = vld [vmem:[%s2982_s18 + $0x8] sm:$0xf]  ;;  %s2848_s17 = smul.u32 48, %s3816_s14 }
  0x11   : > { %426 = vst [vmem:[#allocation2 + $0xd0] sm:$0xf] %v1107_v2  ;;  %441 = vst [vmem:[#allocation2 + $0x40] sm:$0xf] %v3007_v4  ;;  %v3017_v6 = vcombine.high %v3007_v4, %v3007_v4  ;;  %v3072_v12 = vld [vmem:[%s3063_s20] sm:$0xff]  ;;  %v1132_v14 = vcombine.high %v3069_v11, %v3069_v11  ;;  %v1039_v16 = vcombine.low %v3069_v11, %v3069_v11  ;;  %v3160_v28 = vld [vmem:[%s3001_s25 + $0x8] sm:$0xff] }
  0x12   : > { %434 = vst [vmem:[#allocation2 + $0x160] sm:$0xf] %v3011_v5  ;;  %v3076_v13 = vcombine.high %v3072_v12, %v3072_v12  ;;  %449 = vst [vmem:[#allocation3 + $0x18] sm:$0xf] %v3072_v12  ;;  %v429_v18 = vld [vmem:[%s2995_s22 + $0x8] sm:$0xf]  ;;  %v3186_v42 = vcombine.low %v3160_v28, %v3160_v28  ;;  %v3197_v48 = vcombine.low %v3007_v4, %v3007_v4  ;;  %s3506_s14 = scalar_lea.vmem %s3814_s10, %s2848_s17 }
  0x13   : > { %1018 = vrot.lane.b32.xlu1 %v1103_v1, %s2899_s26  ;;  %927 = vrot.lane.b32.xlu0 %v2985_v0, %s2900_s27  ;;  %442 = vst [vmem:[#allocation2 + $0x100] sm:$0xf] %v3017_v6  ;;  %1854 = vst [vmem:[#allocation4 + $0x38] sm:$0xf] %v2906_v15  ;;  %v3203_v49 = vcombine.high %v3160_v28, %v3160_v28  ;;  %vm2907_vm10 = vmmov 0   ;;  %s2909_s15 = smov 19  }
  0x14   : > { %450 = vst [vmem:[#allocation3 + $0x38] sm:$0xf] %v3076_v13  ;;  %427 = vst [vmem:[#allocation2 + $0x10] sm:$0xf] %v421_v17  ;;  %vm1871_vm11 = vcmask 1043608   ;;  %vm1864_vm12 = vcmask 154624  }
  0x15   : > { %435 = vst [vmem:[#allocation2 + $0x128] sm:$0xf] %v429_v18  ;;  %vm1895_vm13 = vcmask 1047708   ;;  %vm1875_vm14 = vcmask 150528   ;;  %vm1899_vm15 = vcmask 154628  }
  0x17   : > { %1111 = vrot.lane.b32.xlu0 %v1107_v2, %s2898_s19  ;;  %925 = vrot.lane.b32.xlu1 %v1107_v2, %s2900_s27 }
  0x1b   : > { %1020 = vrot.lane.b32.xlu0 %v1015_v7, %s2899_s26  ;;  %923 = vrot.lane.b32.xlu1 %v1103_v1, %s2900_s27 }
  0x1f   : > { %1016 = vrot.lane.b32.xlu0 %v1014_v8, %s2899_s26  ;;  %739 = vrot.lane.b32.xlu1 %v1107_v2, %s2901_s28 }
  0x23   : > { %741 = vrot.lane.b32.xlu0 %v2985_v0, %s2901_s28  ;;  %832 = vrot.lane.b32.xlu1 %v1103_v1, %s2902_s29 }
  0x27   : > { %834 = vrot.lane.b32.xlu0 %v1015_v7, %s2902_s29  ;;  %737 = vrot.lane.b32.xlu1 %v1103_v1, %s2901_s28 }
  0x2b   : > { %830 = vrot.lane.b32.xlu0 %v1014_v8, %s2902_s29  ;;  %553 = vrot.lane.b32.xlu1 %v1107_v2, %s2903_s30 }
  0x2f   : > { %555 = vrot.lane.b32.xlu0 %v2985_v0, %s2903_s30  ;;  %646 = vrot.lane.b32.xlu1 %v1103_v1, %s2904_s11 }
  0x33   : > { %648 = vrot.lane.b32.xlu0 %v1015_v7, %s2904_s11  ;;  %551 = vrot.lane.b32.xlu1 %v1103_v1, %s2903_s30 }
  0x37   : > { %644 = vrot.lane.b32.xlu0 %v1014_v8, %s2904_s11  ;;  %460 = vrot.lane.b32.xlu1 %v1103_v1, %s2905_s12 }
  0x3b   : > { %462 = vrot.lane.b32.xlu0 %v1015_v7, %s2905_s12  ;;  %1133 = vrot.lane.b32.xlu1 %v3004_v3, %s2898_s19 }
  0x3f   : > { %1135 = vrot.lane.b32.xlu0 %v3011_v5, %s2898_s19  ;;  %458 = vrot.lane.b32.xlu1 %v1014_v8, %s2905_s12 }
  0x43   : > { %1115 = vrot.lane.b32.xlu0 %v1108_v9, %s2898_s19  ;;  %947 = vrot.lane.b32.xlu1 %v3004_v3, %s2900_s27 }
  0x47   : > { %949 = vrot.lane.b32.xlu0 %v3011_v5, %s2900_s27  ;;  %1040 = vrot.lane.b32.xlu1 %v1038_v10, %s2899_s26 }
  0x4b   : > { %1042 = vrot.lane.b32.xlu0 %v3004_v3, %s2899_s26  ;;  %1137 = vrot.lane.b32.xlu1 %v3069_v11, %s2898_s19 }
  0x4f   : > { %1139 = vrot.lane.b32.xlu0 %v1132_v14, %s2898_s19  ;;  %929 = vrot.lane.b32.xlu1 %v1108_v9, %s2900_s27 }
  0x53   : > { %1022 = vrot.lane.b32.xlu0 %v2985_v0, %s2899_s26  ;;  %761 = vrot.lane.b32.xlu1 %v3004_v3, %s2901_s28 }
  0x57   : > { %763 = vrot.lane.b32.xlu0 %v3011_v5, %s2901_s28  ;;  %854 = vrot.lane.b32.xlu1 %v1038_v10, %s2902_s29 }
  0x5b   : > { %856 = vrot.lane.b32.xlu0 %v3004_v3, %s2902_s29  ;;  %951 = vrot.lane.b32.xlu1 %v3069_v11, %s2900_s27 }
  0x5f   : > { %953 = vrot.lane.b32.xlu0 %v1132_v14, %s2900_s27  ;;  %1044 = vrot.lane.b32.xlu1 %v1039_v16, %s2899_s26 }
  0x63   : > { %1046 = vrot.lane.b32.xlu0 %v3069_v11, %s2899_s26  ;;  %743 = vrot.lane.b32.xlu1 %v1108_v9, %s2901_s28 }
  0x67   : > { %836 = vrot.lane.b32.xlu0 %v2985_v0, %s2902_s29  ;;  %575 = vrot.lane.b32.xlu1 %v3004_v3, %s2903_s30 }
  0x6b   : > { %577 = vrot.lane.b32.xlu0 %v3011_v5, %s2903_s30  ;;  %668 = vrot.lane.b32.xlu1 %v1038_v10, %s2904_s11 }
  0x6f   : > { %670 = vrot.lane.b32.xlu0 %v3004_v3, %s2904_s11  ;;  %765 = vrot.lane.b32.xlu1 %v3069_v11, %s2901_s28 }
  0x73   : > { %767 = vrot.lane.b32.xlu0 %v1132_v14, %s2901_s28  ;;  %858 = vrot.lane.b32.xlu1 %v1039_v16, %s2902_s29 }
  0x77   : > { %860 = vrot.lane.b32.xlu0 %v3069_v11, %s2902_s29  ;;  %557 = vrot.lane.b32.xlu1 %v1108_v9, %s2903_s30 }
  0x7b   : > { %650 = vrot.lane.b32.xlu0 %v2985_v0, %s2904_s11  ;;  %482 = vrot.lane.b32.xlu1 %v1038_v10, %s2905_s12 }
  0x7f   : > { %484 = vrot.lane.b32.xlu0 %v3004_v3, %s2905_s12  ;;  %579 = vrot.lane.b32.xlu1 %v3069_v11, %s2903_s30 }
  0x81   : > { %v3141_v19 = vpop.permute.xlu0 %1113  ;;  %v1110_v20 = vpop.permute.xlu1 %1109 }
  0x83   : > { %581 = vrot.lane.b32.xlu0 %v1132_v14, %s2903_s30  ;;  %672 = vrot.lane.b32.xlu1 %v1039_v16, %s2904_s11 }
  0x85   : > { %v1019_v21 = vpop.permute.xlu1 %1018  ;;  %v3145_v22 = vpop.permute.xlu0 %927 }
  0x87   : > { %674 = vrot.lane.b32.xlu0 %v3069_v11, %s2904_s11  ;;  %464 = vrot.lane.b32.xlu1 %v2985_v0, %s2905_s12 }
  0x89   : > { %v1112_v23 = vpop.permute.xlu0 %1111  ;;  %v926_v24 = vpop.permute.xlu1 %925 }
  0x8a   : > { %v1118_v25 = vsel %vm1117_vm0, %v1110_v20, %v1112_v23  ;;  %v1119_v26 = vsel %vm1117_vm0, %v1112_v23, %v3141_v19  ;;  %v933_v27 = vsel %vm931_vm1, %v926_v24, %v3145_v22 }
  0x8b   : > { %1124 = vst [vmem:[#allocation2 + $0x68] sm:$0xf] %v1118_v25  ;;  %1125 = vst [vmem:[#allocation2 + $0x60] sm:$0xf] %v1119_v26  ;;  %486 = vrot.lane.b32.xlu0 %v1039_v16, %s2905_s12  ;;  %488 = vrot.lane.b32.xlu1 %v3069_v11, %s2905_s12  ;;  %v3258_v25 = vld [vmem:[%s3809_s5] sm:$0xf] }
  0x8c   : > { %939 = vst [vmem:[#allocation2 + $0xb8] sm:$0xf] %v933_v27 }
  0x8d   : > { %v3162_v29 = vpop.permute.xlu0 %1020  ;;  %v924_v30 = vpop.permute.xlu1 %923 }
  0x8e   : > { %v1026_v31 = vsel %vm1024_vm2, %v1019_v21, %v3162_v29  ;;  %v932_v32 = vsel %vm931_vm1, %v924_v30, %v926_v24 }
  0x8f   : > { %1032 = vst [vmem:[#allocation2 + $0xb8] sm:$0xf0] %v1026_v31  ;;  %938 = vst [vmem:[#allocation2 + $0x98] sm:$0xf] %v932_v32  ;;  %1158 = vrot.lane.b32.xlu0 %v3017_v6, %s2898_s19  ;;  %1160 = vrot.lane.b32.xlu1 %v3160_v28, %s2898_s19 }
  0x91   : > { %v1017_v33 = vpop.permute.xlu0 %1016  ;;  %v740_v34 = vpop.permute.xlu1 %739 }
  0x92   : > { %v1025_v35 = vsel %vm1024_vm2, %v1017_v33, %v1019_v21  ;;  %v1234_v36 = vld [vmem:[#allocation2 + $0x60] sm:$0xf]  ;;  %v1233_v37 = vld [vmem:[#allocation2 + $0x68] sm:$0xf] }
  0x93   : > { %1031 = vst [vmem:[#allocation2 + $0x98] sm:$0xf0] %v1025_v35  ;;  %2734 = vmatprep.subr.msk.mxu0 %vm1246_vm3, %v1234_v36  ;;  %1156 = vrot.lane.b32.xlu0 %v3007_v4, %s2898_s19  ;;  %v437_v36 = vld [vmem:[%s3001_s25 + $0x8] sm:$0xf] }
  0x94   : > { %972 = vrot.lane.b32.xlu1 %v3017_v6, %s2900_s27  ;;  %2735 = vmatpush1.msk.msra.mxu0 %vm1246_vm3, %v1233_v37  ;;  %443 = vst [vmem:[#allocation2 + $0x108] sm:$0xf] %v437_v36 }
  0x95   : > { %v3178_v38 = vpop.permute.xlu0 %741  ;;  %v833_v39 = vpop.permute.xlu1 %832 }
  0x96   : > { %v747_v40 = vsel %vm745_vm4, %v740_v34, %v3178_v38  ;;  %v1225_v41 = vld [vmem:[#allocation2 + $0xb8] sm:$0xff] }
  0x97   : > { %753 = vst [vmem:[#allocation2 + $0xd8] sm:$0xf] %v747_v40  ;;  %1298 = vmatprep.subr.mxu0 %v1225_v41  ;;  %974 = vrot.lane.b32.xlu0 %v3160_v28, %s2900_s27 }
  0x98   : > { %1065 = vrot.lane.b32.xlu1 %v3007_v4, %s2899_s26 }
  0x99   : > { %v3190_v43 = vpop.permute.xlu0 %834  ;;  %v738_v44 = vpop.permute.xlu1 %737 }
  0x9a   : > { %v840_v45 = vsel %vm838_vm5, %v833_v39, %v3190_v43  ;;  %v746_v46 = vsel %vm745_vm4, %v738_v44, %v740_v34  ;;  %v1224_v47 = vld [vmem:[#allocation2 + $0x98] sm:$0xff] }
  0x9b   : > { %846 = vst [vmem:[#allocation2 + $0xd8] sm:$0xf0] %v840_v45  ;;  %752 = vst [vmem:[#allocation2 + $0x118] sm:$0xf] %v746_v46  ;;  %1299 = vmatpush1.msra.mxu0 %v1224_v47  ;;  %1067 = vrot.lane.b32.xlu0 %v3186_v42, %s2899_s26  ;;  %v3297_v45 = vld [vmem:[%s3063_s20 + $0x8] sm:$0xff] }
  0x9c   : > { %970 = vrot.lane.b32.xlu1 %v3007_v4, %s2900_s27 }
  0x9d   : > { %v831_v50 = vpop.permute.xlu0 %830  ;;  %v554_v51 = vpop.permute.xlu1 %553 }
  0x9e   : > { %v839_v52 = vsel %vm838_vm5, %v831_v50, %v833_v39 }
  0x9f   : > { %845 = vst [vmem:[#allocation2 + $0x118] sm:$0xf0] %v839_v52  ;;  %1063 = vrot.lane.b32.xlu0 %v3197_v48, %s2899_s26 }
  0xa0   : > { %1162 = vrot.lane.b32.xlu1 %v3203_v49, %s2898_s19 }
  0xa1   : > { %v3212_v53 = vpop.permute.xlu0 %555  ;;  %v647_v54 = vpop.permute.xlu1 %646 }
  0xa2   : > { %v561_v55 = vsel %vm559_vm6, %v554_v51, %v3212_v53  ;;  %v1216_v56 = vld [vmem:[#allocation2 + $0xd8] sm:$0xff] }
  0xa3   : > { %567 = vst [vmem:[#allocation2 + $0x110] sm:$0xf] %v561_v55  ;;  %1300 = vmatprep.subr.mxu0 %v1216_v56  ;;  %786 = vrot.lane.b32.xlu0 %v3017_v6, %s2901_s28 }
  0xa4   : > { %788 = vrot.lane.b32.xlu1 %v3160_v28, %s2901_s28 }
  0xa5   : > { %v3220_v57 = vpop.permute.xlu0 %648  ;;  %v552_v58 = vpop.permute.xlu1 %551 }
  0xa6   : > { %v654_v59 = vsel %vm652_vm7, %v647_v54, %v3220_v57  ;;  %v560_v60 = vsel %vm559_vm6, %v552_v58, %v554_v51  ;;  %v1215_v61 = vld [vmem:[#allocation2 + $0x118] sm:$0xff] }
  0xa7   : > { %660 = vst [vmem:[#allocation2 + $0x110] sm:$0xf0] %v654_v59  ;;  %566 = vst [vmem:[#allocation2 + $0x88] sm:$0xf] %v560_v60  ;;  %1301 = vmatpush1.msra.mxu0 %v1215_v61  ;;  %879 = vrot.lane.b32.xlu0 %v3007_v4, %s2902_s29  ;;  %v3318_v61 = vcombine.low %v3297_v45, %v3297_v45 }
  0xa8   : > { %881 = vrot.lane.b32.xlu1 %v3186_v42, %s2902_s29 }
  0xa9   : > { %v645_v62 = vpop.permute.xlu0 %644  ;;  %v461_v63 = vpop.permute.xlu1 %460 }
  0xaa   : > { %v653_v0 = vsel %vm652_vm7, %v645_v62, %v647_v54 }
  0xab   : > { %659 = vst [vmem:[#allocation2 + $0x88] sm:$0xf0] %v653_v0  ;;  %784 = vrot.lane.b32.xlu0 %v3007_v4, %s2901_s28 }
  0xac   : > { %877 = vrot.lane.b32.xlu1 %v3197_v48, %s2902_s29 }
  0xad   : > { %v3234_v1 = vpop.permute.xlu0 %462  ;;  %v1134_v2 = vpop.permute.xlu1 %1133 }
  0xae   : > { %v468_v3 = vsel %vm466_vm8, %v461_v63, %v3234_v1  ;;  %v1207_v5 = vld [vmem:[#allocation2 + $0x110] sm:$0xff] }
  0xaf   : > { %474 = vst [vmem:[#allocation2 + $0xd0] sm:$0xf0] %v468_v3  ;;  %1302 = vmatprep.subr.mxu0 %v1207_v5  ;;  %976 = vrot.lane.b32.xlu0 %v3203_v49, %s2900_s27 }
  0xb0   : > { %1069 = vrot.lane.b32.xlu1 %v3160_v28, %s2899_s26 }
  0xb1   : > { %v1136_v7 = vpop.permute.xlu0 %1135  ;;  %v459_v8 = vpop.permute.xlu1 %458 }
  0xb2   : > { %v1141_v9 = vsel %vm1117_vm0, %v1134_v2, %v1136_v7  ;;  %v467_v10 = vsel %vm466_vm8, %v459_v8, %v461_v63  ;;  %v1206_v11 = vld [vmem:[#allocation2 + $0x88] sm:$0xff]  ;;  %v3332_v2 = vcombine.high %v3297_v45, %v3297_v45 }
  0xb3   : > { %1147 = vst [vmem:[#allocation2 + $0x30] sm:$0xf] %v1141_v9  ;;  %473 = vst [vmem:[#allocation2 + $0xb0] sm:$0xf0] %v467_v10  ;;  %1303 = vmatpush1.msra.mxu0 %v1206_v11  ;;  %600 = vrot.lane.b32.xlu0 %v3017_v6, %s2903_s30 }
  0xb4   : > { %602 = vrot.lane.b32.xlu1 %v3160_v28, %s2903_s30 }
  0xb5   : > { %v1116_v14 = vpop.permute.xlu0 %1115  ;;  %v948_v16 = vpop.permute.xlu1 %947 }
  0xb6   : > { %v1120_v17 = vsel %vm1117_vm0, %v3141_v19, %v1116_v14  ;;  %v1198_v18 = vld [vmem:[#allocation2 + $0xd0] sm:$0xff] }
  0xb7   : > { %1126 = vst [vmem:[#allocation2 + $0x150] sm:$0xf] %v1120_v17  ;;  %693 = vrot.lane.b32.xlu0 %v3007_v4, %s2904_s11  ;;  %1304 = vmatprep.subr.mxu0 %v1198_v18 }
  0xb8   : > { %695 = vrot.lane.b32.xlu1 %v3186_v42, %s2904_s11 }
  0xb9   : > { %v950_v20 = vpop.permute.xlu0 %949  ;;  %v1041_v21 = vpop.permute.xlu1 %1040 }
  0xba   : > { %v955_v6 = vsel %vm931_vm1, %v948_v16, %v950_v20  ;;  %v1236_v23 = vld [vmem:[#allocation2 + $0x30] sm:$0xf] }
  0xbb   : > { %v1197_v24 = vld [vmem:[#allocation2 + $0xb0] sm:$0xff]  ;;  %961 = vst [vmem:[#allocation2 + $0x138] sm:$0xf] %v955_v6  ;;  %598 = vrot.lane.b32.xlu0 %v3007_v4, %s2903_s30  ;;  %2737 = vmatprep.subr.msk.mxu1 %vm1246_vm3, %v1236_v23 }
  0xbc   : > { %691 = vrot.lane.b32.xlu1 %v3197_v48, %s2904_s11  ;;  %1305 = vmatpush1.msra.mxu0 %v1197_v24 }
  0xbd   : > { %v1043_v19 = vpop.permute.xlu0 %1042  ;;  %v1138_v26 = vpop.permute.xlu1 %1137  ;;  %2736 = vmatmul.mubr.msk.f32.vlgmr.msra.gmra.mxu0 %vm1242_vm9, %v3258_v25 }
  0xbe   : > { %v1048_v27 = vsel %vm1024_vm2, %v1041_v21, %v1043_v19  ;;  %v1142_v30 = vsel %vm1117_vm0, %v1136_v7, %v1138_v26  ;;  %v1235_v31 = vld [vmem:[#allocation2 + $0x150] sm:$0xf]  ;;  %1480 = vmatprep.mubr.f32.mxu0 %v2906_v15 }
  0xbf   : > { %1054 = vst [vmem:[#allocation2 + $0x138] sm:$0xf0] %v1048_v27  ;;  %1148 = vst [vmem:[#allocation2 + $0x18] sm:$0xf] %v1142_v30  ;;  %790 = vrot.lane.b32.xlu0 %v3203_v49, %s2901_s28  ;;  %2738 = vmatpush1.msk.msra.mxu1 %vm1246_vm3, %v1235_v31 }
  0xc0   : > { %883 = vrot.lane.b32.xlu1 %v3160_v28, %s2902_s29 }
  0xc1   : > { %v1140_v32 = vpop.permute.xlu0 %1139  ;;  %v930_v33 = vpop.permute.xlu1 %929 }
  0xc2   : > { %v1143_v34 = vsel %vm1117_vm0, %v1138_v26, %v1140_v32  ;;  %v934_v35 = vsel %vm931_vm1, %v3145_v22, %v930_v33 }
  0xc3   : > { %1149 = vst [vmem:[#allocation2 + $0x70] sm:$0xf] %v1143_v34  ;;  %940 = vst [vmem:[#allocation2 + $0x120] sm:$0xf] %v934_v35  ;;  %507 = vrot.lane.b32.xlu0 %v3007_v4, %s2905_s12 }
  0xc4   : > { %509 = vrot.lane.b32.xlu1 %v3186_v42, %s2905_s12 }
  0xc5   : > { %v1023_v37 = vpop.permute.xlu0 %1022  ;;  %v762_v39 = vpop.permute.xlu1 %761 }
  0xc6   : > { %v1027_v40 = vsel %vm1024_vm2, %v3162_v29, %v1023_v37  ;;  %v1227_v41 = vld [vmem:[#allocation2 + $0x138] sm:$0xff] }
  0xc7   : > { %1033 = vst [vmem:[#allocation2 + $0x120] sm:$0xf0] %v1027_v40  ;;  %505 = vrot.lane.b32.xlu0 %v3197_v48, %s2905_s12  ;;  %1369 = vmatprep.subr.mxu1 %v1227_v41  ;;  %v1237_v29 = vld [vmem:[#allocation2 + $0x18] sm:$0xf] }
  0xc8   : > { %604 = vrot.lane.b32.xlu1 %v3203_v49, %s2903_s30 }
  0xc9   : > { %v764_v4 = vpop.permute.xlu0 %763  ;;  %v855_v22 = vpop.permute.xlu1 %854 }
  0xca   : > { %v769_v42 = vsel %vm745_vm4, %v762_v39, %v764_v4  ;;  %v1238_v44 = vld [vmem:[#allocation2 + $0x70] sm:$0xf] }
  0xcb   : > { %775 = vst [vmem:[#allocation2] sm:$0xf] %v769_v42  ;;  %697 = vrot.lane.b32.xlu0 %v3160_v28, %s2904_s11  ;;  %2740 = vmatprep.subr.msk.mxu0 %vm1246_vm3, %v1238_v44 }
  0xcc   : > { %1181 = vrot.lane.b32.xlu1 %v3076_v13, %s2898_s19  ;;  %2741 = vmatpush1.msk.msra.mxu0 %vm1246_vm3, %v1237_v29 }
  0xcd   : > { %v857_v46 = vpop.permute.xlu0 %856  ;;  %v952_v47 = vpop.permute.xlu1 %951 }
  0xce   : > { %v862_v48 = vsel %vm838_vm5, %v855_v22, %v857_v46  ;;  %v956_v49 = vsel %vm931_vm1, %v950_v20, %v952_v47  ;;  %v1226_v50 = vld [vmem:[#allocation2 + $0x120] sm:$0xff] }
  0xcf   : > { %868 = vst [vmem:[#allocation2] sm:$0xf0] %v862_v48  ;;  %962 = vst [vmem:[#allocation2 + $0x58] sm:$0xf] %v956_v49  ;;  %1183 = vrot.lane.b32.xlu0 %v3297_v45, %s2898_s19  ;;  %1370 = vmatpush1.msra.mxu1 %v1226_v50 }
  0xd0   : > { %511 = vrot.lane.b32.xlu1 %v3160_v28, %s2905_s12 }
  0xd1   : > { %v954_v51 = vpop.permute.xlu0 %953  ;;  %v1045_v52 = vpop.permute.xlu1 %1044 }
  0xd2   : > { %v957_v54 = vsel %vm931_vm1, %v952_v47, %v954_v51  ;;  %v1049_v55 = vsel %vm1024_vm2, %v1043_v19, %v1045_v52 }
  0xd3   : > { %963 = vst [vmem:[#allocation2 + $0xc0] sm:$0xf] %v957_v54  ;;  %1055 = vst [vmem:[#allocation2 + $0x58] sm:$0xf0] %v1049_v55  ;;  %1179 = vrot.lane.b32.xlu0 %v3072_v12, %s2898_s19 }
  0xd4   : > { %995 = vrot.lane.b32.xlu1 %v3076_v13, %s2900_s27 }
  0xd5   : > { %v1047_v56 = vpop.permute.xlu0 %1046  ;;  %v744_v58 = vpop.permute.xlu1 %743 }
  0xd6   : > { %v1050_v59 = vsel %vm1024_vm2, %v1045_v52, %v1047_v56  ;;  %v748_v28 = vsel %vm745_vm4, %v3178_v38, %v744_v58  ;;  %v1218_v60 = vld [vmem:[#allocation2] sm:$0xff]  ;;  %v3326_v38 = vcombine.low %v3072_v12, %v3072_v12 }
  0xd7   : > { %1056 = vst [vmem:[#allocation2 + $0xc0] sm:$0xf0] %v1050_v59  ;;  %754 = vst [vmem:[#allocation2 + $0xa0] sm:$0xf] %v748_v28  ;;  %997 = vrot.lane.b32.xlu0 %v3297_v45, %s2900_s27  ;;  %1371 = vmatprep.subr.mxu1 %v1218_v60 }
  0xd8   : > { %1088 = vrot.lane.b32.xlu1 %v3072_v12, %s2899_s26 }
  0xd9   : > { %v837_v62 = vpop.permute.xlu0 %836  ;;  %v576_v63 = vpop.permute.xlu1 %575 }
  0xda   : > { %v841_v0 = vsel %vm838_vm5, %v3190_v43, %v837_v62  ;;  %v1228_v8 = vld [vmem:[#allocation2 + $0x58] sm:$0xff] }
  0xdb   : > { %847 = vst [vmem:[#allocation2 + $0xa0] sm:$0xf0] %v841_v0  ;;  %1090 = vrot.lane.b32.xlu0 %v3318_v61, %s2899_s26  ;;  %v2908_v0 = vmov 0  }
  0xdc   : > { %993 = vrot.lane.b32.xlu1 %v3072_v12, %s2900_s27  ;;  %2869 = vset.pattern.permute.xlu0 %v2908_v0 }
  0xdd   : > { %v578_v3 = vpop.permute.xlu0 %577  ;;  %v669_v5 = vpop.permute.xlu1 %668  ;;  %2870 = vset.pattern.permute.xlu1 %v2908_v0 }
  0xde   : > { %v583_v7 = vsel %vm559_vm6, %v576_v63, %v578_v3  ;;  %v1229_v43 = vld [vmem:[#allocation2 + $0xc0] sm:$0xff] }
  0xdf   : > { %589 = vst [vmem:[#allocation2 + $0xf8] sm:$0xf] %v583_v7  ;;  %1086 = vrot.lane.b32.xlu0 %v3326_v38, %s2899_s26  ;;  %1440 = vmatprep.subr.mxu0 %v1229_v43 }
  0xe0   : > { %1185 = vrot.lane.b32.xlu1 %v3332_v2, %s2898_s19  ;;  %1441 = vmatpush1.msra.mxu0 %v1228_v8 }
  0xe1   : > { %v671_v9 = vpop.permute.xlu0 %670  ;;  %v766_v10 = vpop.permute.xlu1 %765 }
  0xe2   : > { %v676_v11 = vsel %vm652_vm7, %v669_v5, %v671_v9  ;;  %v770_v14 = vsel %vm745_vm4, %v764_v4, %v766_v10  ;;  %v1217_v16 = vld [vmem:[#allocation2 + $0xa0] sm:$0xff] }
  0xe3   : > { %682 = vst [vmem:[#allocation2 + $0xf8] sm:$0xf0] %v676_v11  ;;  %776 = vst [vmem:[#allocation2 + $0x20] sm:$0xf] %v770_v14  ;;  %809 = vrot.lane.b32.xlu0 %v3076_v13, %s2901_s28  ;;  %1372 = vmatpush1.msra.mxu1 %v1217_v16 }
  0xe4   : > { %811 = vrot.lane.b32.xlu1 %v3297_v45, %s2901_s28 }
  0xe5   : > { %v768_v17 = vpop.permute.xlu0 %767  ;;  %v859_v18 = vpop.permute.xlu1 %858 }
  0xe6   : > { %v771_v20 = vsel %vm745_vm4, %v766_v10, %v768_v17  ;;  %v863_v21 = vsel %vm838_vm5, %v857_v46, %v859_v18 }
  0xe7   : > { %777 = vst [vmem:[#allocation2 + $0xe0] sm:$0xf] %v771_v20  ;;  %869 = vst [vmem:[#allocation2 + $0x20] sm:$0xf0] %v863_v21  ;;  %902 = vrot.lane.b32.xlu0 %v3072_v12, %s2902_s29 }
  0xe8   : > { %904 = vrot.lane.b32.xlu1 %v3318_v61, %s2902_s29 }
  0xe9   : > { %v861_v6 = vpop.permute.xlu0 %860  ;;  %v558_v23 = vpop.permute.xlu1 %557 }
  0xea   : > { %v864_v24 = vsel %vm838_vm5, %v859_v18, %v861_v6  ;;  %v562_v19 = vsel %vm559_vm6, %v3212_v53, %v558_v23  ;;  %v1209_v26 = vld [vmem:[#allocation2 + $0xf8] sm:$0xff] }
  0xeb   : > { %870 = vst [vmem:[#allocation2 + $0xe0] sm:$0xf0] %v864_v24  ;;  %568 = vst [vmem:[#allocation2 + $0x140] sm:$0xf] %v562_v19  ;;  %807 = vrot.lane.b32.xlu0 %v3072_v12, %s2901_s28  ;;  %1373 = vmatprep.subr.mxu1 %v1209_v26 }
  0xec   : > { %900 = vrot.lane.b32.xlu1 %v3326_v38, %s2902_s29 }
  0xed   : > { %v651_v27 = vpop.permute.xlu0 %650  ;;  %v483_v30 = vpop.permute.xlu1 %482 }
  0xee   : > { %v655_v31 = vsel %vm652_vm7, %v3220_v57, %v651_v27  ;;  %v1219_v57 = vld [vmem:[#allocation2 + $0x20] sm:$0xff] }
  0xef   : > { %661 = vst [vmem:[#allocation2 + $0x140] sm:$0xf0] %v655_v31  ;;  %999 = vrot.lane.b32.xlu0 %v3332_v2, %s2900_s27 }
  0xf0   : > { %1092 = vrot.lane.b32.xlu1 %v3297_v45, %s2899_s26 }
  0xf1   : > { %v485_v53 = vpop.permute.xlu0 %484  ;;  %v580_v32 = vpop.permute.xlu1 %579 }
  0xf2   : > { %v490_v33 = vsel %vm466_vm8, %v483_v30, %v485_v53  ;;  %v584_v34 = vsel %vm559_vm6, %v578_v3, %v580_v32  ;;  %v1220_v35 = vld [vmem:[#allocation2 + $0xe0] sm:$0xff] }
  0xf3   : > { %496 = vst [vmem:[#allocation2 + $0x48] sm:$0xf0] %v490_v33  ;;  %590 = vst [vmem:[#allocation2 + $0x50] sm:$0xf] %v584_v34  ;;  %623 = vrot.lane.b32.xlu0 %v3076_v13, %s2903_s30  ;;  %1442 = vmatprep.subr.mxu0 %v1220_v35 }
  0xf4   : > { %625 = vrot.lane.b32.xlu1 %v3297_v45, %s2903_s30  ;;  %1443 = vmatpush1.msra.mxu0 %v1219_v57 }
  0xf5   : > { %v582_v36 = vpop.permute.xlu0 %581  ;;  %v673_v37 = vpop.permute.xlu1 %672 }
  0xf6   : > { %v585_v39 = vsel %vm559_vm6, %v580_v32, %v582_v36  ;;  %v677_v40 = vsel %vm652_vm7, %v671_v9, %v673_v37  ;;  %v1208_v41 = vld [vmem:[#allocation2 + $0x140] sm:$0xff] }
  0xf7   : > { %591 = vst [vmem:[#allocation2 + $0x8] sm:$0xf] %v585_v39  ;;  %683 = vst [vmem:[#allocation2 + $0x50] sm:$0xf0] %v677_v40  ;;  %716 = vrot.lane.b32.xlu0 %v3072_v12, %s2904_s11  ;;  %1374 = vmatpush1.msra.mxu1 %v1208_v41 }
  0xf8   : > { %718 = vrot.lane.b32.xlu1 %v3318_v61, %s2904_s11 }
  0xf9   : > { %v675_v13 = vpop.permute.xlu0 %674  ;;  %v465_v4 = vpop.permute.xlu1 %464 }
  0xfa   : > { %v678_v22 = vsel %vm652_vm7, %v673_v37, %v675_v13  ;;  %v469_v42 = vsel %vm466_vm8, %v3234_v1, %v465_v4  ;;  %v1200_v44 = vld [vmem:[#allocation2 + $0x48] sm:$0xff] }
  0xfb   : > { %684 = vst [vmem:[#allocation2 + $0x8] sm:$0xf0] %v678_v22  ;;  %475 = vst [vmem:[#allocation2 + $0x10] sm:$0xf0] %v469_v42  ;;  %621 = vrot.lane.b32.xlu0 %v3072_v12, %s2903_s30  ;;  %1375 = vmatprep.subr.mxu1 %v1200_v44  ;;  %v445_v1 = vld [vmem:[%s3063_s20 + $0x8] sm:$0xf] }
  0xfc   : > { %714 = vrot.lane.b32.xlu1 %v3326_v38, %s2904_s11  ;;  %451 = vst [vmem:[#allocation3 + $0x48] sm:$0xf] %v445_v1 }
  0xfd   : > { %v487_v29 = vpop.permute.xlu0 %486  ;;  %v489_v46 = vpop.permute.xlu1 %488 }
  0xfe   : > { %v491_v47 = vsel %vm466_vm8, %v485_v53, %v487_v29  ;;  %v492_v48 = vsel %vm466_vm8, %v487_v29, %v489_v46  ;;  %v1210_v55 = vld [vmem:[#allocation2 + $0x50] sm:$0xff] }
  0xff   : > { %497 = vst [vmem:[#allocation2 + $0x160] sm:$0xf0] %v491_v47  ;;  %498 = vst [vmem:[#allocation2 + $0x128] sm:$0xf0] %v492_v48  ;;  %813 = vrot.lane.b32.xlu0 %v3332_v2, %s2901_s28 }
 0x100   : > { %906 = vrot.lane.b32.xlu1 %v3297_v45, %s2902_s29 }
 0x101   : > { %v1159_v49 = vpop.permute.xlu0 %1158  ;;  %v1161_v50 = vpop.permute.xlu1 %1160 }
 0x102   : > { %v1165_v51 = vsel %vm1117_vm0, %v1159_v49, %v1161_v50  ;;  %v1199_v52 = vld [vmem:[#allocation2 + $0x10] sm:$0xff]  ;;  %v1211_v54 = vld [vmem:[#allocation2 + $0x8] sm:$0xff] }
 0x103   : > { %1171 = vst [vmem:[#allocation2 + $0xc8] sm:$0xf] %v1165_v51  ;;  %530 = vrot.lane.b32.xlu0 %v3072_v12, %s2905_s12  ;;  %1376 = vmatpush1.msra.mxu1 %v1199_v52 }
 0x104   : > { %532 = vrot.lane.b32.xlu1 %v3318_v61, %s2905_s12  ;;  %1444 = vmatprep.subr.mxu0 %v1211_v54 }
 0x105   : > { %1445 = vmatpush1.msra.mxu0 %v1210_v55  ;;  %v1157_v56 = vpop.permute.xlu0 %1156  ;;  %2739 = vmatmul.mubr.msk.f32.vlgmr.msra.gmra.mxu1 %vm1242_vm9, %v3258_v25 }
 0x106   : > { %v1164_v58 = vsel %vm1117_vm0, %v1157_v56, %v1159_v49  ;;  %v973_v59 = vpop.permute.xlu1 %972  ;;  %v1202_v28 = vld [vmem:[#allocation2 + $0x128] sm:$0xff]  ;;  %v1201_v60 = vld [vmem:[#allocation2 + $0x160] sm:$0xff]  ;;  %1551 = vmatprep.mubr.f32.mxu1 %v2906_v15 }
 0x107   : > { %1170 = vst [vmem:[#allocation2 + $0x148] sm:$0xf] %v1164_v58  ;;  %528 = vrot.lane.b32.xlu0 %v3326_v38, %s2905_s12  ;;  %1446 = vmatprep.subr.mxu0 %v1202_v28  ;;  %v1644_v38 = vld [vmem:[%s3812_s8] sm:$0xf] }
 0x108   : > { %627 = vrot.lane.b32.xlu1 %v3332_v2, %s2903_s30  ;;  %1447 = vmatpush1.msra.mxu0 %v1201_v60 }
 0x109   : > { %v975_v12 = vpop.permute.xlu0 %974  ;;  %2791 = vmatprep.subr.mxu0 %v2906_v15  ;;  %2742 = vmatmul.mubr.msk.f32.vlgmr.msra.gmra.mxu0 %vm1242_vm9, %v3258_v25 }
 0x10a   : > { %v979_v61 = vsel %vm931_vm1, %v973_v59, %v975_v12  ;;  %v1066_v62 = vpop.permute.xlu1 %1065  ;;  %v1240_v63 = vld [vmem:[#allocation2 + $0xc8] sm:$0xf]  ;;  %2801 = vmatprep.mubr.msk.f32.mxu0 %vm2907_vm10, %v2906_v15 }
 0x10b   : > { %985 = vst [vmem:[#allocation2 + $0xa8] sm:$0xf] %v979_v61  ;;  %720 = vrot.lane.b32.xlu0 %v3297_v45, %s2904_s11  ;;  %2743 = vmatprep.subr.msk.mxu1 %vm1246_vm3, %v1240_v63 }
 0x10c   : > { %534 = vrot.lane.b32.xlu1 %v3297_v45, %s2905_s12 }
 0x10d   : > { %v1068_v2 = vpop.permute.xlu0 %1067 }
 0x10e   : > { %v1072_v3 = vsel %vm1024_vm2, %v1066_v62, %v1068_v2  ;;  %v971_v5 = vpop.permute.xlu1 %970  ;;  %v1239_v7 = vld [vmem:[#allocation2 + $0x148] sm:$0xf] }
 0x10f   : > { %1078 = vst [vmem:[#allocation2 + $0xa8] sm:$0xf0] %v1072_v3  ;;  %v978_v43 = vsel %vm931_vm1, %v971_v5, %v973_v59  ;;  %2744 = vmatpush1.msk.msra.mxu1 %vm1246_vm3, %v1239_v7  ;;  %1647 = vperm.xlu0 %2869, %v1644_v38  }
 0x110   : > { %984 = vst [vmem:[#allocation2 + $0xe8] sm:$0xf] %v978_v43 }
 0x111   : > { %v1064_v45 = vpop.permute.xlu0 %1063 }
 0x112   : > { %v1071_v8 = vsel %vm1024_vm2, %v1064_v45, %v1066_v62  ;;  %v1163_v9 = vpop.permute.xlu1 %1162 }
 0x113   : > { %1077 = vst [vmem:[#allocation2 + $0xe8] sm:$0xf0] %v1071_v8  ;;  %v1166_v10 = vsel %vm1117_vm0, %v1161_v50, %v1163_v9 }
 0x114   : > { %1172 = vst [vmem:[#allocation2 + $0x38] sm:$0xf] %v1166_v10 }
 0x115   : > { %v787_v11 = vpop.permute.xlu0 %786 }
 0x116   : > { %v789_v14 = vpop.permute.xlu1 %788  ;;  %v1231_v16 = vld [vmem:[#allocation2 + $0xa8] sm:$0xff] }
 0x117   : > { %v793_v17 = vsel %vm745_vm4, %v787_v11, %v789_v14  ;;  %1511 = vmatprep.subr.mxu1 %v1231_v16 }
 0x118   : > { %799 = vst [vmem:[#allocation2 + $0x158] sm:$0xf] %v793_v17 }
 0x119   : > { %v880_v18 = vpop.permute.xlu0 %879 }
 0x11a   : > { %v882_v20 = vpop.permute.xlu1 %881  ;;  %v1230_v21 = vld [vmem:[#allocation2 + $0xe8] sm:$0xff] }
 0x11b   : > { %v886_v6 = vsel %vm838_vm5, %v880_v18, %v882_v20  ;;  %1512 = vmatpush1.msra.mxu1 %v1230_v21  ;;  %v1241_v23 = vld [vmem:[#allocation2 + $0x38] sm:$0xf] }
 0x11c   : > { %892 = vst [vmem:[#allocation2 + $0x158] sm:$0xf0] %v886_v6  ;;  %2792 = vmatpush3.msk.msra.mxu0 %vm1246_vm3, %v1241_v23 }
 0x11d   : > { %v785_v24 = vpop.permute.xlu0 %784  ;;  %2793 = vmatprep.subr.mxu0 %v2906_v15 }
 0x11e   : > { %v792_v19 = vsel %vm745_vm4, %v785_v24, %v787_v11  ;;  %v878_v26 = vpop.permute.xlu1 %877 }
 0x11f   : > { %798 = vst [vmem:[#allocation2 + $0xf0] sm:$0xf] %v792_v19  ;;  %v885_v27 = vsel %vm838_vm5, %v878_v26, %v880_v18 }
 0x120   : > { %891 = vst [vmem:[#allocation2 + $0xf0] sm:$0xf0] %v885_v27 }
 0x121   : > { %v977_v30 = vpop.permute.xlu0 %976 }
 0x122   : > { %v980_v31 = vsel %vm931_vm1, %v975_v12, %v977_v30  ;;  %v1070_v53 = vpop.permute.xlu1 %1069 }
 0x123   : > { %986 = vst [vmem:[#allocation2 + $0x90] sm:$0xf] %v980_v31  ;;  %v1073_v32 = vsel %vm1024_vm2, %v1068_v2, %v1070_v53  ;;  %v1222_v33 = vld [vmem:[#allocation2 + $0x158] sm:$0xff] }
 0x124   : > { %1079 = vst [vmem:[#allocation2 + $0x90] sm:$0xf0] %v1073_v32  ;;  %1513 = vmatprep.subr.mxu1 %v1222_v33  ;;  %v3466_v33 = vld [vmem:[#allocation4] sm:$0xff] }
 0x125   : > { %v601_v34 = vpop.permute.xlu0 %600 }
 0x126   : > { %v603_v35 = vpop.permute.xlu1 %602 }
 0x127   : > { %v607_v57 = vsel %vm559_vm6, %v601_v34, %v603_v35  ;;  %v1221_v36 = vld [vmem:[#allocation2 + $0xf0] sm:$0xff] }
 0x128   : > { %613 = vst [vmem:[#allocation2 + $0x28] sm:$0xf] %v607_v57  ;;  %1514 = vmatpush1.msra.mxu1 %v1221_v36 }
 0x129   : > { %v694_v37 = vpop.permute.xlu0 %693 }
 0x12a   : > { %v696_v39 = vpop.permute.xlu1 %695 }
 0x12b   : > { %v700_v40 = vsel %vm652_vm7, %v694_v37, %v696_v39  ;;  %v1232_v41 = vld [vmem:[#allocation2 + $0x90] sm:$0xff] }
 0x12c   : > { %706 = vst [vmem:[#allocation2 + $0x28] sm:$0xf0] %v700_v40  ;;  %2794 = vmatpush3.msra.mxu0 %v1232_v41 }
 0x12d   : > { %v599_v13 = vpop.permute.xlu0 %598  ;;  %2795 = vmatprep.subr.mxu0 %v2906_v15 }
 0x12e   : > { %v606_v4 = vsel %vm559_vm6, %v599_v13, %v601_v34  ;;  %v692_v22 = vpop.permute.xlu1 %691 }
 0x12f   : > { %612 = vst [vmem:[#allocation2 + $0x78] sm:$0xf] %v606_v4  ;;  %v699_v42 = vsel %vm652_vm7, %v692_v22, %v694_v37 }
 0x130   : > { %705 = vst [vmem:[#allocation2 + $0x78] sm:$0xf0] %v699_v42 }
 0x131   : > { %v791_v44 = vpop.permute.xlu0 %790 }
 0x132   : > { %v794_v29 = vsel %vm745_vm4, %v789_v14, %v791_v44  ;;  %v884_v46 = vpop.permute.xlu1 %883 }
 0x133   : > { %800 = vst [vmem:[#allocation2 + $0x80] sm:$0xf] %v794_v29  ;;  %v887_v47 = vsel %vm838_vm5, %v882_v20, %v884_v46  ;;  %v1213_v48 = vld [vmem:[#allocation2 + $0x28] sm:$0xff] }
 0x134   : > { %893 = vst [vmem:[#allocation2 + $0x80] sm:$0xf0] %v887_v47  ;;  %1515 = vmatprep.subr.mxu1 %v1213_v48 }
 0x135   : > { %v508_v1 = vpop.permute.xlu0 %507 }
 0x136   : > { %v510_v49 = vpop.permute.xlu1 %509 }
 0x137   : > { %v514_v50 = vsel %vm466_vm8, %v508_v1, %v510_v49  ;;  %v1212_v51 = vld [vmem:[#allocation2 + $0x78] sm:$0xff] }
 0x138   : > { %520 = vst [vmem:[#allocation2 + $0x100] sm:$0xf0] %v514_v50  ;;  %1516 = vmatpush1.msra.mxu1 %v1212_v51 }
 0x139   : > { %v506_v52 = vpop.permute.xlu0 %505 }
 0x13a   : > { %v513_v54 = vsel %vm466_vm8, %v506_v52, %v508_v1  ;;  %v605_v55 = vpop.permute.xlu1 %604 }
 0x13b   : > { %519 = vst [vmem:[#allocation2 + $0x40] sm:$0xf0] %v513_v54  ;;  %v608_v56 = vsel %vm559_vm6, %v603_v35, %v605_v55  ;;  %v1223_v58 = vld [vmem:[#allocation2 + $0x80] sm:$0xff] }
 0x13c   : > { %614 = vst [vmem:[#allocation2 + $0x130] sm:$0xf] %v608_v56  ;;  %2796 = vmatpush3.msra.mxu0 %v1223_v58 }
 0x13d   : > { %v698_v59 = vpop.permute.xlu0 %697  ;;  %2797 = vmatprep.subr.mxu0 %v2906_v15 }
 0x13e   : > { %v701_v28 = vsel %vm652_vm7, %v696_v39, %v698_v59  ;;  %v1182_v60 = vpop.permute.xlu1 %1181 }
 0x13f   : > { %707 = vst [vmem:[#allocation2 + $0x130] sm:$0xf0] %v701_v28  ;;  %v1204_v12 = vld [vmem:[#allocation2 + $0x100] sm:$0xff] }
 0x140   : > { %1517 = vmatprep.subr.mxu1 %v1204_v12 }
 0x141   : > { %v1184_v61 = vpop.permute.xlu0 %1183 }
 0x142   : > { %v1188_v62 = vsel %vm1117_vm0, %v1182_v60, %v1184_v61  ;;  %v512_v63 = vpop.permute.xlu1 %511  ;;  %v1203_v0 = vld [vmem:[#allocation2 + $0x40] sm:$0xff] }
 0x143   : > { %1194 = vst [vmem:[#allocation3 + $0x50] sm:$0xf] %v1188_v62  ;;  %v515_v38 = vsel %vm466_vm8, %v510_v49, %v512_v63  ;;  %1518 = vmatpush1.msra.mxu1 %v1203_v0 }
 0x144   : > { %521 = vst [vmem:[#allocation2 + $0x108] sm:$0xf0] %v515_v38  ;;  %2745 = vmatmul.mubr.msk.f32.vlgmr.msra.gmra.mxu1 %vm1242_vm9, %v3258_v25 }
 0x145   : > { %v1180_v2 = vpop.permute.xlu0 %1179  ;;  %1726 = vmatprep.mubr.f32.mxu1 %v2906_v15 }
 0x146   : > { %v1187_v3 = vsel %vm1117_vm0, %v1180_v2, %v1182_v60  ;;  %v996_v5 = vpop.permute.xlu1 %995  ;;  %v1214_v7 = vld [vmem:[#allocation2 + $0x130] sm:$0xff] }
 0x147   : > { %1193 = vst [vmem:[#allocation3 + $0x10] sm:$0xf] %v1187_v3  ;;  %2798 = vmatpush3.msra.mxu0 %v1214_v7 }
 0x148   : > { %2799 = vmatprep.subr.mxu0 %v2906_v15 }
 0x149   : > { %v998_v43 = vpop.permute.xlu0 %997 }
 0x14a   : > { %v1002_v45 = vsel %vm931_vm1, %v996_v5, %v998_v43  ;;  %v1089_v8 = vpop.permute.xlu1 %1088  ;;  %v1642_v9 = vld [vmem:[#allocation3 + $0x50] sm:$0xf] }
 0x14b   : > { %1008 = vst [vmem:[#allocation3 + $0x20] sm:$0xf] %v1002_v45  ;;  %v1205_v10 = vld [vmem:[#allocation2 + $0x108] sm:$0xff]  ;;  %2748 = vmatprep.subr.msk.mxu1 %vm1246_vm3, %v1642_v9 }
 0x14c   : > { %2800 = vmatpush3.msra.mxu0 %v1205_v10 }
 0x14d   : > { %v1091_v11 = vpop.permute.xlu0 %1090  ;;  %2804 = vmatprep.subr.mxu0 %v2906_v15  ;;  %2802 = vmatmul.mubr.msk.f32.vlgmr.msra.gmra.mxu0 %vm1242_vm9, %v3258_v25 }
 0x14e   : > { %v1095_v14 = vsel %vm1024_vm2, %v1089_v8, %v1091_v11  ;;  %v994_v16 = vpop.permute.xlu1 %993  ;;  %v1641_v17 = vld [vmem:[#allocation3 + $0x10] sm:$0xf]  ;;  %2814 = vmatprep.mubr.msk.f32.mxu0 %vm2907_vm10, %v2906_v15 }
 0x14f   : > { %1101 = vst [vmem:[#allocation3 + $0x20] sm:$0xf0] %v1095_v14  ;;  %v1001_v18 = vsel %vm931_vm1, %v994_v16, %v996_v5  ;;  %2749 = vmatpush1.msk.msra.mxu1 %vm1246_vm3, %v1641_v17 }
 0x150   : > { %1007 = vst [vmem:[#allocation3 + $0x60] sm:$0xf] %v1001_v18 }
 0x151   : > { %v1087_v20 = vpop.permute.xlu0 %1086 }
 0x152   : > { %v1094_v21 = vsel %vm1024_vm2, %v1087_v20, %v1089_v8  ;;  %v1186_v6 = vpop.permute.xlu1 %1185 }
 0x153   : > { %1100 = vst [vmem:[#allocation3 + $0x60] sm:$0xf0] %v1094_v21  ;;  %v1189_v25 = vsel %vm1117_vm0, %v1184_v61, %v1186_v6  ;;  %v1811_v21 = vlaneseq }
 0x154   : > { %1195 = vst [vmem:[#allocation3 + $0x58] sm:$0xf] %v1189_v25 }
 0x155   : > { %v810_v23 = vpop.permute.xlu0 %809 }
 0x156   : > { %v812_v24 = vpop.permute.xlu1 %811  ;;  %v1639_v19 = vld [vmem:[#allocation3 + $0x20] sm:$0xff] }
 0x157   : > { %v816_v26 = vsel %vm745_vm4, %v810_v23, %v812_v24  ;;  %1686 = vmatprep.subr.mxu1 %v1639_v19 }
 0x158   : > { %822 = vst [vmem:[#allocation3 + $0x70] sm:$0xf] %v816_v26 }
 0x159   : > { %v903_v15 = vpop.permute.xlu0 %902 }
 0x15a   : > { %v905_v27 = vpop.permute.xlu1 %904  ;;  %v1638_v30 = vld [vmem:[#allocation3 + $0x60] sm:$0xff] }
 0x15b   : > { %v909_v31 = vsel %vm838_vm5, %v903_v15, %v905_v27  ;;  %1687 = vmatpush1.msra.mxu1 %v1638_v30  ;;  %v1643_v53 = vld [vmem:[#allocation3 + $0x58] sm:$0xf] }
 0x15c   : > { %915 = vst [vmem:[#allocation3 + $0x70] sm:$0xf0] %v909_v31  ;;  %2805 = vmatpush3.msk.msra.mxu0 %vm1246_vm3, %v1643_v53 }
 0x15d   : > { %v808_v32 = vpop.permute.xlu0 %807  ;;  %2806 = vmatprep.subr.mxu0 %v3466_v33 }
 0x15e   : > { %v815_v34 = vsel %vm745_vm4, %v808_v32, %v810_v23  ;;  %v901_v35 = vpop.permute.xlu1 %900  ;;  %v1812_v23 = vshrl.u32 %v1811_v21, 7 }
 0x15f   : > { %821 = vst [vmem:[#allocation3 + $0x8] sm:$0xf] %v815_v34  ;;  %v908_v57 = vsel %vm838_vm5, %v901_v35, %v903_v15  ;;  %v1803_v15 = vld [vmem:[%s3808_s4] sm:$0x7] }
 0x160   : > { %914 = vst [vmem:[#allocation3 + $0x8] sm:$0xf0] %v908_v57  ;;  %v1813_v26 = vsub.s32 0, %v1812_v23  ;;  %v1817_v31 = vsub.s32 1, %v1812_v23 }
 0x161   : > { %v1000_v36 = vpop.permute.xlu0 %999 }
 0x162   : > { %v1003_v37 = vsel %vm931_vm1, %v998_v43, %v1000_v36  ;;  %v1093_v39 = vpop.permute.xlu1 %1092  ;;  %v1628_v43 = vld [vmem:[%s3810_s6] sm:$0xf]  ;;  %v1814_v53 = vrot.slane %v1803_v15, %v1813_v26 }
 0x163   : > { %1009 = vst [vmem:[#allocation3 + $0x30] sm:$0xf] %v1003_v37  ;;  %v1096_v40 = vsel %vm1024_vm2, %v1091_v11, %v1093_v39  ;;  %v1636_v41 = vld [vmem:[#allocation3 + $0x70] sm:$0xff]  ;;  %v1821_v37 = vsub.s32 2, %v1812_v23 }
 0x164   : > { %1102 = vst [vmem:[#allocation3 + $0x30] sm:$0xf0] %v1096_v40  ;;  %1688 = vmatprep.subr.mxu1 %v1636_v41 }
 0x165   : > { %v624_v13 = vpop.permute.xlu0 %623 }
 0x166   : > { %v626_v4 = vpop.permute.xlu1 %625 }
 0x167   : > { %v630_v22 = vsel %vm559_vm6, %v624_v13, %v626_v4  ;;  %v1635_v42 = vld [vmem:[#allocation3 + $0x8] sm:$0xff] }
 0x168   : > { %636 = vst [vmem:[#allocation3 + $0x28] sm:$0xf] %v630_v22  ;;  %1689 = vmatpush1.msra.mxu1 %v1635_v42 }
 0x169   : > { %v717_v44 = vpop.permute.xlu0 %716 }
 0x16a   : > { %v719_v29 = vpop.permute.xlu1 %718 }
 0x16b   : > { %v723_v46 = vsel %vm652_vm7, %v717_v44, %v719_v29  ;;  %v1640_v47 = vld [vmem:[#allocation3 + $0x30] sm:$0xff] }
 0x16c   : > { %729 = vst [vmem:[#allocation3 + $0x28] sm:$0xf0] %v723_v46  ;;  %2807 = vmatpush3.msra.mxu0 %v1640_v47 }
 0x16d   : > { %v622_v48 = vpop.permute.xlu0 %621  ;;  %2808 = vmatprep.subr.mxu0 %v3466_v33 }
 0x16e   : > { %v629_v1 = vsel %vm559_vm6, %v622_v48, %v624_v13  ;;  %v715_v49 = vpop.permute.xlu1 %714  ;;  %v1818_v13 = vrot.slane %v1803_v15, %v1817_v31 }
 0x16f   : > { %635 = vst [vmem:[#allocation3 + $0x40] sm:$0xf] %v629_v1  ;;  %v722_v50 = vsel %vm652_vm7, %v715_v49, %v717_v44  ;;  %v1822_v49 = vrot.slane %v1803_v15, %v1821_v37 }
 0x170   : > { %728 = vst [vmem:[#allocation3 + $0x40] sm:$0xf0] %v722_v50 }
 0x171   : > { %v814_v51 = vpop.permute.xlu0 %813 }
 0x172   : > { %v817_v52 = vsel %vm745_vm4, %v812_v24, %v814_v51  ;;  %v907_v54 = vpop.permute.xlu1 %906 }
 0x173   : > { %823 = vst [vmem:[#allocation3 + $0x68] sm:$0xf] %v817_v52  ;;  %v910_v55 = vsel %vm838_vm5, %v905_v27, %v907_v54  ;;  %v1633_v56 = vld [vmem:[#allocation3 + $0x28] sm:$0xff] }
 0x174   : > { %916 = vst [vmem:[#allocation3 + $0x68] sm:$0xf0] %v910_v55  ;;  %1690 = vmatprep.subr.mxu1 %v1633_v56 }
 0x175   : > { %v531_v58 = vpop.permute.xlu0 %530 }
 0x176   : > { %v533_v59 = vpop.permute.xlu1 %532 }
 0x177   : > { %v537_v28 = vsel %vm466_vm8, %v531_v58, %v533_v59  ;;  %v1632_v60 = vld [vmem:[#allocation3 + $0x40] sm:$0xff] }
 0x178   : > { %543 = vst [vmem:[#allocation3 + $0x38] sm:$0xf0] %v537_v28  ;;  %1691 = vmatpush1.msra.mxu1 %v1632_v60 }
 0x179   : > { %v529_v12 = vpop.permute.xlu0 %528 }
 0x17a   : > { %v536_v61 = vsel %vm466_vm8, %v529_v12, %v531_v58  ;;  %v628_v62 = vpop.permute.xlu1 %627 }
 0x17b   : > { %542 = vst [vmem:[#allocation3 + $0x18] sm:$0xf0] %v536_v61  ;;  %v631_v63 = vsel %vm559_vm6, %v626_v4, %v628_v62  ;;  %v1637_v0 = vld [vmem:[#allocation3 + $0x68] sm:$0xff] }
 0x17c   : > { %637 = vst [vmem:[#allocation3] sm:$0xf] %v631_v63  ;;  %2809 = vmatpush3.msra.mxu0 %v1637_v0 }
 0x17d   : > { %v721_v38 = vpop.permute.xlu0 %720  ;;  %2810 = vmatprep.subr.mxu0 %v3466_v33  ;;  %v1340_v10 = vpop.f32.mrf.mxu0 }
 0x17e   : > { %v724_v2 = vsel %vm652_vm7, %v719_v29, %v721_v38  ;;  %v535_v3 = vpop.permute.xlu1 %534 }
 0x17f   : > { %730 = vst [vmem:[#allocation3] sm:$0xf0] %v724_v2  ;;  %v538_v5 = vsel %vm466_vm8, %v533_v59, %v535_v3  ;;  %v1630_v7 = vld [vmem:[#allocation3 + $0x38] sm:$0xff]  ;;  %v1342_v11 = vpop.f32.mrf.mxu0 }
 0x180   : > { %544 = vst [vmem:[#allocation3 + $0x48] sm:$0xf0] %v538_v5  ;;  %1692 = vmatprep.subr.mxu1 %v1630_v7 }
 0x182   : > { %v1629_v45 = vld [vmem:[#allocation3 + $0x18] sm:$0xff] }
 0x183   : > { %1693 = vmatpush1.msra.mxu1 %v1629_v45 }
 0x184   : > { %2750 = vmatmul.mubr.msk.f32.vlgmr.msra.gmra.mxu1 %vm1242_vm9, %v1628_v43 }
 0x185   : > { %2505 = vmatprep.mubr.f32.mxu1 %v3466_v33 }
 0x186   : > { %v1634_v8 = vld [vmem:[#allocation3] sm:$0xff] }
 0x187   : > { %2811 = vmatpush3.msra.mxu0 %v1634_v8  ;;  %v1631_v9 = vld [vmem:[#allocation3 + $0x48] sm:$0xff] }
 0x188   : > { %2812 = vmatprep.subr.mxu0 %v3466_v33 }
 0x189   : > { %2813 = vmatpush3.msra.mxu0 %v1631_v9 }
 0x18a   : > { %2815 = vmatmul.mubr.msk.f32.vlgmr.msra.gmra.mxu0 %vm1242_vm9, %v1628_v43  ;;  %2817 = vmatprep.subr.mxu0 %v3466_v33  ;;  %v1648_v19 = vpop.permute.xlu0 %1647 }
 0x18b   : > { %2845 = vmatprep.mubr.msk.f32.mxu0 %vm2907_vm10, %v3466_v33 }
 0x1c5   : > { %v1411_v20 = vpop.f32.mrf.mxu1 }
 0x1c7   : > { %v1413_v6 = vpop.f32.mrf.mxu1 }
 0x1c9   : > { %v1482_v14 = vpop.f32.mrf.mxu0 }
 0x1cb   : > { %v1484_v16 = vpop.f32.mrf.mxu0 }
 0x204   : > { %v1553_v25 = vpop.f32.mrf.mxu1 }
 0x206   : > { %v1555_v24 = vpop.f32.mrf.mxu1 }
 0x20d   : > { %v1624_v17 = vpop.f32.mrf.mxu0 }
 0x20f   : > { %v2803_v18 = vpop.f32.mrf.mxu0 }
 0x244   : > { %v1728_v27 = vpop.f32.mrf.mxu1 }
 0x245   : > { %v1729_v30 = vadd.f32 %v1728_v27, %v1648_v19 }
 0x246   : > { %v1730_v32 = vpop.f32.mrf.mxu1 }
 0x247   : > { %v1804_v34 = vadd.f32 %v1729_v30, %v1340_v10  ;;  %v1829_v35 = vadd.f32 %v1729_v30, %v1413_v6  ;;  %v1838_v57 = vadd.f32 %v1729_v30, %v1553_v25  ;;  %v1731_v36 = vadd.f32 %v1730_v32, %v1648_v19 }
 0x249   : > { %v1832_v39 = vmax.f32 %v1829_v35, 0.0  ;;  %v1841_v40 = vmax.f32 %v1838_v57, 0.0  ;;  %v1805_v41 = vadd.f32 %v1731_v36, %v1342_v11  ;;  %v1807_v4 = vmax.f32 %v1804_v34, 0.0 }
 0x24a   : > { %v1830_v22 = vadd.f32 %v1731_v36, %v1482_v14  ;;  %v1839_v42 = vadd.f32 %v1731_v36, %v1555_v24  ;;  %v1799_v44 = vpop.f32.mrf.mxu0 }
 0x24b   : > { %v1835_v29 = vmul.f32 %v1832_v39, %v1814_v53  ;;  %v1808_v46 = vmax.f32 %v1805_v41, 0.0  ;;  %v1800_v47 = vadd.f32 %v1799_v44, %v1648_v19  ;;  %v3500_v48 = vmul.f32 %v1841_v40, %v1814_v53 }
 0x24c   : > { %v1833_v1 = vmax.f32 %v1830_v22, 0.0  ;;  %v2816_v50 = vpop.f32.mrf.mxu0  ;;  %v1826_v58 = vmul.f32 %v1814_v53, %v1807_v4  ;;  %v1842_v28 = vmax.f32 %v1839_v42, 0.0 }
 0x24d   : > { %v1806_v51 = vadd.f32 %v1800_v47, %v1411_v20  ;;  %v1831_v52 = vadd.f32 %v1800_v47, %v1484_v16  ;;  %v1840_v54 = vadd.f32 %v1800_v47, %v1624_v17  ;;  %1904 = vrot.lane.b32.xlu1 %v3500_v48, %s2909_s15  ;;  %v1827_v55 = vmul.f32 %v1818_v13, %v1808_v46 }
 0x24e   : > { %v1836_v56 = vmul.f32 %v1833_v1, %v1818_v13  ;;  %v1880_v59 = vrot.slane %v1835_v29, 4  ;;  %v3511_v2 = vmul.f32 %v1842_v28, %v1818_v13 }
 0x24f   : > { %v1809_v60 = vmax.f32 %v1806_v51, 0.0  ;;  %v1834_v12 = vmax.f32 %v1831_v52, 0.0  ;;  %1860 = vrot.lane.b32.xlu0 %v1827_v55, %s2909_s15  ;;  %v1843_v0 = vmax.f32 %v1840_v54, 0.0 }
 0x250   : > { %v2617_v61 = vsel %vm1246_vm3, %v1826_v58, %v1880_v59  ;;  %v1881_v62 = vrot.slane %v1836_v56, 4 }
 0x251   : > { %v1837_v63 = vmul.f32 %v1834_v12, %v1822_v49  ;;  %1858 = vrot.lane.b32.xlu1 %v1826_v58, %s2909_s15  ;;  %2623 = vst [vmem:[%s3506_s14] sm:$0xff] %v2617_v61  ;;  %v1828_v5 = vmul.f32 %v1822_v49, %v1809_v60  ;;  %v3515_v7 = vmul.f32 %v1843_v0, %v1822_v49 }
 0x252   : > { %v2618_v38 = vsel %vm1246_vm3, %v1827_v55, %v1881_v62 }
 0x253   : > { %1883 = vrot.lane.b32.xlu0 %v1880_v59, %s2909_s15  ;;  %2624 = vst [vmem:[%s3506_s14 + $0x8] sm:$0xff] %v2618_v38  ;;  %v1882_v3 = vrot.slane %v1837_v63, 4 }
 0x255   : > { %1906 = vrot.lane.b32.xlu1 %v3511_v2, %s2909_s15  ;;  %v2619_v43 = vsel %vm1246_vm3, %v1828_v5, %v1882_v3 }
 0x256   : > { %2625 = vst [vmem:[%s3506_s14 + $0x10] sm:$0xff] %v2619_v43 }
 0x257   : > { %1908 = vrot.lane.b32.xlu0 %v3515_v7, %s2909_s15 }
 0x259   : > { %1885 = vrot.lane.b32.xlu1 %v1881_v62, %s2909_s15 }
 0x25b   : > { %1887 = vrot.lane.b32.xlu0 %v1882_v3, %s2909_s15 }
 0x25d   : > { %1862 = vrot.lane.b32.xlu1 %v1828_v5, %s2909_s15 }
 0x2bf   : > { %v1905_v45 = vpop.permute.xlu1 %1904 }
 0x2c0   : > { %1916 = vst.msk [vmem:[#allocation4 + $0x20] sm:$0xf] %vm1871_vm11, %v1905_v45 }
 0x2c1   : > { %v1861_v8 = vpop.permute.xlu0 %1860 }
 0x2c3   : > { %v1859_v9 = vpop.permute.xlu1 %1858 }
 0x2c4   : > { %v1865_v10 = vsel %vm1864_vm12, %v1859_v9, %v1861_v8  ;;  %1872 = vst.msk [vmem:[#allocation4] sm:$0xf] %vm1871_vm11, %v1859_v9 }
 0x2c5   : > { %1873 = vst [vmem:[#allocation4 + $0x8] sm:$0xf] %v1865_v10  ;;  %v1884_v11 = vpop.permute.xlu0 %1883 }
 0x2c6   : > { %1896 = vst.msk [vmem:[#allocation4] sm:$0xf0] %vm1895_vm13, %v1884_v11 }
 0x2c7   : > { %v1923_v14 = vld [vmem:[#allocation4 + $0x20] sm:$0xf]  ;;  %v1907_v16 = vpop.permute.xlu1 %1906 }
 0x2c8   : > { %v2222_v17 = vld [vmem:[#allocation4 + $0x20] sm:$0xf]  ;;  %1929 = vst [vmem:[#allocation5 + $0xc8] sm:$0xf] %v1923_v14  ;;  %v1910_v20 = vsel %vm1864_vm12, %v1905_v45, %v1907_v16 }
 0x2c9   : > { %v2334_v18 = vld [vmem:[#allocation4 + $0x20] sm:$0xf]  ;;  %2242 = vrot.lane.b32.xlu0 %v2222_v17, %s2900_s27  ;;  %1917 = vst [vmem:[#allocation4 + $0x28] sm:$0xf] %v1910_v20  ;;  %v1909_v21 = vpop.permute.xlu0 %1908 }
 0x2ca   : > { %2354 = vrot.lane.b32.xlu1 %v2334_v18, %s2898_s19  ;;  %v1911_v6 = vsel %vm1864_vm12, %v1907_v16, %v1909_v21  ;;  %1919 = vst.msk [vmem:[#allocation4 + $0x38] sm:$0xf] %vm1875_vm14, %v1909_v21  ;;  %v2110_v23 = vld [vmem:[#allocation4 + $0x20] sm:$0xf] }
 0x2cb   : > { %1918 = vst [vmem:[#allocation4 + $0x30] sm:$0xf] %v1911_v6  ;;  %v1886_v25 = vpop.permute.xlu1 %1885  ;;  %v1998_v30 = vld [vmem:[#allocation4 + $0x20] sm:$0xf] }
 0x2cc   : > { %v1889_v24 = vsel %vm1864_vm12, %v1884_v11, %v1886_v25  ;;  %v2272_v41 = vld [vmem:[#allocation4 + $0x20] sm:$0xf] }
 0x2cd   : > { %2130 = vrot.lane.b32.xlu0 %v2110_v23, %s2901_s28  ;;  %v3528_v19 = vld [vmem:[#allocation4] sm:$0xff]  ;;  %1897 = vst [vmem:[#allocation4 + $0x8] sm:$0xf0] %v1889_v24  ;;  %v1888_v26 = vpop.permute.xlu0 %1887  ;;  %v2288_v13 = vrot.slane %v2272_v41, 4 }
 0x2ce   : > { %v1890_v15 = vsel %vm1864_vm12, %v1886_v25, %v1888_v26  ;;  %1900 = vst.msk [vmem:[#allocation4 + $0x18] sm:$0xf0] %vm1899_vm15, %v1888_v26  ;;  %2234 = vrot.lane.b32.xlu1 %v3528_v19, %s2900_s27  ;;  %v3550_v39 = vrot.slane %v3528_v19, 4  ;;  %v2160_v4 = vld [vmem:[#allocation4 + $0x20] sm:$0xf] }
 0x2cf   : > { %1898 = vst [vmem:[#allocation4 + $0x10] sm:$0xf0] %v1890_v15  ;;  %v1863_v27 = vpop.permute.xlu1 %1862  ;;  %v2176_v42 = vrot.slane %v2160_v4, 4  ;;  %v2048_v44 = vld [vmem:[#allocation4 + $0x20] sm:$0xf] }
 0x2d0   : > { %v1866_v31 = vsel %vm1864_vm12, %v1861_v8, %v1863_v27  ;;  %1876 = vst.msk [vmem:[#allocation4 + $0x18] sm:$0xf] %vm1875_vm14, %v1863_v27  ;;  %v2223_v34 = vld [vmem:[#allocation4 + $0x28] sm:$0xf]  ;;  %v2289_v22 = vsel %vm1246_vm3, %v3550_v39, %v2288_v13  ;;  %v2064_v46 = vrot.slane %v2048_v44, 4 }
 0x2d1   : > { %2018 = vrot.lane.b32.xlu0 %v1998_v30, %s2903_s30  ;;  %1874 = vst [vmem:[#allocation4 + $0x10] sm:$0xf] %v1866_v31  ;;  %v2335_v57 = vld [vmem:[#allocation4 + $0x28] sm:$0xf]  ;;  %v2177_v29 = vsel %vm1246_vm3, %v3550_v39, %v2176_v42  ;;  %v1936_v47 = vld [vmem:[#allocation4 + $0x20] sm:$0xf] }
 0x2d2   : > { %v1925_v53 = vld [vmem:[#allocation4 + $0x30] sm:$0xf]  ;;  %2122 = vrot.lane.b32.xlu1 %v3528_v19, %s2901_s28  ;;  %v2111_v36 = vld [vmem:[#allocation4 + $0x28] sm:$0xf]  ;;  %v2065_v1 = vsel %vm1246_vm3, %v3550_v39, %v2064_v46  ;;  %v1952_v49 = vrot.slane %v1936_v47, 4 }
 0x2d3   : > { %1931 = vst [vmem:[#allocation5 + $0x30] sm:$0xf] %v1925_v53  ;;  %v1924_v37 = vld [vmem:[#allocation4 + $0x28] sm:$0xf]  ;;  %v2337_v51 = vld [vmem:[#allocation4 + $0x38] sm:$0xf] }
 0x2d4   : > { %v3540_v32 = vld [vmem:[#allocation4 + $0x8] sm:$0xff]  ;;  %1930 = vst [vmem:[#allocation5 + $0x128] sm:$0xf] %v1924_v37  ;;  %v1953_v50 = vsel %vm1246_vm3, %v3550_v39, %v1952_v49  ;;  %v2224_v54 = vld [vmem:[#allocation4 + $0x30] sm:$0xf]  ;;  %v2582_v49 = vld [vmem:[%s3063_s20] sm:$0xff] }
 0x2d5   : > { %2346 = vrot.lane.b32.xlu0 %v3528_v19, %s2898_s19  ;;  %v1999_v40 = vld [vmem:[#allocation4 + $0x28] sm:$0xf]  ;;  %v3581_v52 = vrot.slane %v3540_v32, 4  ;;  %v2112_v55 = vld [vmem:[#allocation4 + $0x30] sm:$0xf] }
 0x2d6   : > { %2010 = vrot.lane.b32.xlu1 %v3528_v19, %s2903_s30  ;;  %v2273_v56 = vld [vmem:[#allocation4 + $0x28] sm:$0xf]  ;;  %v2000_v58 = vld [vmem:[#allocation4 + $0x30] sm:$0xf]  ;;  %v2225_v45 = vld [vmem:[#allocation4 + $0x38] sm:$0xf] }
 0x2d7   : > { %v2290_v59 = vrot.slane %v2273_v56, 4  ;;  %v2161_v28 = vld [vmem:[#allocation4 + $0x28] sm:$0xf]  ;;  %v2333_v12 = vld [vmem:[#allocation4 + $0x18] sm:$0xff]  ;;  %v2336_v11 = vld [vmem:[#allocation4 + $0x30] sm:$0xf] }
 0x2d8   : > { %v3544_v35 = vld [vmem:[#allocation4 + $0x10] sm:$0xff]  ;;  %v2178_v61 = vrot.slane %v2161_v28, 4  ;;  %v2049_v62 = vld [vmem:[#allocation4 + $0x28] sm:$0xf]  ;;  %v2287_v8 = vrot.slane %v2333_v12, 4 }
 0x2d9   : > { %2244 = vrot.lane.b32.xlu0 %v2223_v34, %s2900_s27  ;;  %v2291_v60 = vsel %vm1246_vm3, %v3581_v52, %v2290_v59  ;;  %v2066_v0 = vrot.slane %v2049_v62, 4  ;;  %v1937_v38 = vld [vmem:[#allocation4 + $0x28] sm:$0xf]  ;;  %v2113_v9 = vld [vmem:[#allocation4 + $0x38] sm:$0xf]  ;;  %v2286_v14 = vrot.slane %v3544_v35, 4 }
 0x2da   : > { %2356 = vrot.lane.b32.xlu1 %v2335_v57, %s2898_s19  ;;  %v2179_v63 = vsel %vm1246_vm3, %v3581_v52, %v2178_v61  ;;  %v1954_v5 = vrot.slane %v1937_v38, 4  ;;  %v2001_v10 = vld [vmem:[#allocation4 + $0x38] sm:$0xf]  ;;  %v2274_v16 = vld [vmem:[#allocation4 + $0x30] sm:$0xf] }
 0x2db   : > { %v2067_v3 = vsel %vm1246_vm3, %v3581_v52, %v2066_v0  ;;  %v2275_v17 = vld [vmem:[#allocation4 + $0x38] sm:$0xf]  ;;  %v2292_v18 = vrot.slane %v2274_v16, 4  ;;  %v2162_v23 = vld [vmem:[#allocation4 + $0x30] sm:$0xf] }
 0x2dc   : > { %v1955_v43 = vsel %vm1246_vm3, %v3581_v52, %v1954_v5  ;;  %v2294_v21 = vrot.slane %v2275_v17, 4  ;;  %v2163_v6 = vld [vmem:[#allocation4 + $0x38] sm:$0xf]  ;;  %v2180_v27 = vrot.slane %v2162_v23, 4  ;;  %v2050_v30 = vld [vmem:[#allocation4 + $0x30] sm:$0xf] }
 0x2dd   : > { %2132 = vrot.lane.b32.xlu0 %v2111_v36, %s2901_s28  ;;  %v2293_v20 = vsel %vm1246_vm3, %v2286_v14, %v2292_v18  ;;  %v2182_v24 = vrot.slane %v2163_v6, 4  ;;  %v2051_v26 = vld [vmem:[#allocation4 + $0x38] sm:$0xf]  ;;  %v2068_v57 = vrot.slane %v2050_v30, 4  ;;  %v1938_v41 = vld [vmem:[#allocation4 + $0x30] sm:$0xf] }
 0x2de   : > { %2296 = vrot.lane.b32.xlu1 %v3550_v39, %s2899_s26  ;;  %v2295_v25 = vsel %vm1246_vm3, %v2287_v8, %v2294_v21  ;;  %v2181_v31 = vsel %vm1246_vm3, %v2286_v14, %v2180_v27  ;;  %v2070_v53 = vrot.slane %v2051_v26, 4  ;;  %v1956_v4 = vrot.slane %v1938_v41, 4  ;;  %v1939_v42 = vld [vmem:[#allocation4 + $0x38] sm:$0xf] }
 0x2df   : > { %v2183_v15 = vsel %vm1246_vm3, %v2287_v8, %v2182_v24  ;;  %v2069_v36 = vsel %vm1246_vm3, %v2286_v14, %v2068_v57  ;;  %v1958_v46 = vrot.slane %v1939_v42, 4 }
 0x2e0   : > { %v2071_v34 = vsel %vm1246_vm3, %v2287_v8, %v2070_v53  ;;  %v1957_v44 = vsel %vm1246_vm3, %v2286_v14, %v1956_v4 }
 0x2e1   : > { %2020 = vrot.lane.b32.xlu0 %v1999_v40, %s2903_s30 }
 0x2e2   : > { %2184 = vrot.lane.b32.xlu1 %v3550_v39, %s2902_s29 }
 0x2e5   : > { %2348 = vrot.lane.b32.xlu0 %v3540_v32, %s2898_s19 }
 0x2e6   : > { %2072 = vrot.lane.b32.xlu1 %v3550_v39, %s2904_s11 }
 0x2e9   : > { %2304 = vrot.lane.b32.xlu0 %v2289_v22, %s2899_s26 }
 0x2ea   : > { %2236 = vrot.lane.b32.xlu1 %v3540_v32, %s2900_s27 }
 0x2ed   : > { %2192 = vrot.lane.b32.xlu0 %v2177_v29, %s2902_s29 }
 0x2ee   : > { %2124 = vrot.lane.b32.xlu1 %v3540_v32, %s2901_s28 }
 0x2f1   : > { %2080 = vrot.lane.b32.xlu0 %v2065_v1, %s2904_s11  ;;  %v1959_v1 = vsel %vm1246_vm3, %v2287_v8, %v1958_v46 }
 0x2f2   : > { %2012 = vrot.lane.b32.xlu1 %v3540_v32, %s2903_s30 }
 0x2f5   : > { %1968 = vrot.lane.b32.xlu0 %v1953_v50, %s2905_s12 }
 0x2f6   : > { %2360 = vrot.lane.b32.xlu1 %v2337_v51, %s2898_s19 }
 0x2f9   : > { %2298 = vrot.lane.b32.xlu0 %v3581_v52, %s2899_s26 }
 0x2fa   : > { %2246 = vrot.lane.b32.xlu1 %v2224_v54, %s2900_s27 }
 0x2fd   : > { %2186 = vrot.lane.b32.xlu0 %v3581_v52, %s2902_s29 }
 0x2fe   : > { %2134 = vrot.lane.b32.xlu1 %v2112_v55, %s2901_s28  ;;  %v2586_v55 = vcombine.high %v2582_v49, %v2582_v49 }
 0x301   : > { %2074 = vrot.lane.b32.xlu0 %v3581_v52, %s2904_s11 }
 0x302   : > { %2022 = vrot.lane.b32.xlu1 %v2000_v58, %s2903_s30 }
 0x305   : > { %2306 = vrot.lane.b32.xlu0 %v2291_v60, %s2899_s26 }
 0x306   : > { %2352 = vrot.lane.b32.xlu1 %v2333_v12, %s2898_s19 }
 0x309   : > { %2194 = vrot.lane.b32.xlu0 %v2179_v63, %s2902_s29 }
 0x30a   : > { %2240 = vrot.lane.b32.xlu1 %v2333_v12, %s2900_s27 }
 0x30d   : > { %2082 = vrot.lane.b32.xlu0 %v2067_v3, %s2904_s11 }
 0x30e   : > { %2128 = vrot.lane.b32.xlu1 %v2333_v12, %s2901_s28 }
 0x311   : > { %1970 = vrot.lane.b32.xlu0 %v1955_v43, %s2905_s12 }
 0x312   : > { %2350 = vrot.lane.b32.xlu1 %v3544_v35, %s2898_s19 }
 0x315   : > { %2248 = vrot.lane.b32.xlu0 %v2225_v45, %s2900_s27 }
 0x316   : > { %2302 = vrot.lane.b32.xlu1 %v2287_v8, %s2899_s26 }
 0x319   : > { %2136 = vrot.lane.b32.xlu0 %v2113_v9, %s2901_s28 }
 0x31a   : > { %2190 = vrot.lane.b32.xlu1 %v2287_v8, %s2902_s29 }
 0x31d   : > { %2024 = vrot.lane.b32.xlu0 %v2001_v10, %s2903_s30 }
 0x31e   : > { %2078 = vrot.lane.b32.xlu1 %v2287_v8, %s2904_s11 }
 0x321   : > { %2358 = vrot.lane.b32.xlu0 %v2336_v11, %s2898_s19 }
 0x322   : > { %2300 = vrot.lane.b32.xlu1 %v2286_v14, %s2899_s26 }
 0x325   : > { %2238 = vrot.lane.b32.xlu0 %v3544_v35, %s2900_s27 }
 0x326   : > { %2188 = vrot.lane.b32.xlu1 %v2286_v14, %s2902_s29 }
 0x329   : > { %2126 = vrot.lane.b32.xlu0 %v3544_v35, %s2901_s28 }
 0x32a   : > { %2076 = vrot.lane.b32.xlu1 %v2286_v14, %s2904_s11 }
 0x32d   : > { %2014 = vrot.lane.b32.xlu0 %v3544_v35, %s2903_s30 }
 0x32e   : > { %2308 = vrot.lane.b32.xlu1 %v2293_v20, %s2899_s26 }
 0x331   : > { %2310 = vrot.lane.b32.xlu0 %v2295_v25, %s2899_s26 }
 0x332   : > { %2016 = vrot.lane.b32.xlu1 %v2333_v12, %s2903_s30 }
 0x335   : > { %2198 = vrot.lane.b32.xlu0 %v2183_v15, %s2902_s29 }
 0x336   : > { %2196 = vrot.lane.b32.xlu1 %v2181_v31, %s2902_s29 }
 0x339   : > { %2086 = vrot.lane.b32.xlu0 %v2071_v34, %s2904_s11 }
 0x33a   : > { %2084 = vrot.lane.b32.xlu1 %v2069_v36, %s2904_s11 }
 0x33b   : > { %v2243_v37 = vpop.permute.xlu0 %2242 }
 0x33c   : > { %v2355_v40 = vpop.permute.xlu1 %2354 }
 0x33d   : > { %1962 = vrot.lane.b32.xlu0 %v3581_v52, %s2905_s12  ;;  %v2583_v52 = vld [vmem:[%s3063_s20 + $0x8] sm:$0xff] }
 0x33e   : > { %1964 = vrot.lane.b32.xlu1 %v2286_v14, %s2905_s12  ;;  %v2587_v60 = vcombine.high %v2583_v52, %v2583_v52 }
 0x33f   : > { %v2131_v13 = vpop.permute.xlu0 %2130 }
 0x340   : > { %v2235_v22 = vpop.permute.xlu1 %2234 }
 0x341   : > { %1960 = vrot.lane.b32.xlu0 %v3550_v39, %s2905_s12  ;;  %v2423_v39 = vld [vmem:[%s3813_s9] sm:$0xf] }
 0x342   : > { %1972 = vrot.lane.b32.xlu1 %v1957_v44, %s2905_s12 }
 0x343   : > { %v2019_v29 = vpop.permute.xlu0 %2018 }
 0x344   : > { %v2123_v47 = vpop.permute.xlu1 %2122 }
 0x345   : > { %1966 = vrot.lane.b32.xlu0 %v2287_v8, %s2905_s12 }
 0x346   : > { %1974 = vrot.lane.b32.xlu1 %v1959_v1, %s2905_s12 }
 0x347   : > { %v2347_v50 = vpop.permute.xlu0 %2346 }
 0x348   : > { %v2011_v51 = vpop.permute.xlu1 %2010 }
 0x349   : > { %2588 = vrot.lane.b32.xlu0 %v2582_v49, %s2901_s28 }
 0x34a   : > { %2426 = vperm.xlu1 %2870, %v2423_v39  }
 0x34b   : > { %v2245_v54 = vpop.permute.xlu0 %2244 }
 0x34c   : > { %v2253_v56 = vsel %vm931_vm1, %v2243_v37, %v2245_v54  ;;  %v3656_v58 = vpop.permute.xlu1 %2356 }
 0x34d   : > { %2265 = vst [vmem:[#allocation5 + $0x148] sm:$0xf] %v2253_v56  ;;  %2592 = vrot.lane.b32.xlu0 %v2583_v52, %s2901_s28  ;;  %v2365_v59 = vsel %vm1117_vm0, %v2355_v40, %v3656_v58 }
 0x34e   : > { %2377 = vst [vmem:[#allocation5 + $0x38] sm:$0xf] %v2365_v59  ;;  %2590 = vrot.lane.b32.xlu1 %v2586_v55, %s2901_s28 }
 0x34f   : > { %v2133_v28 = vpop.permute.xlu0 %2132 }
 0x350   : > { %v2141_v12 = vsel %vm745_vm4, %v2131_v13, %v2133_v28  ;;  %v2297_v61 = vpop.permute.xlu1 %2296 }
 0x351   : > { %2153 = vst [vmem:[#allocation5 + $0x118] sm:$0xf] %v2141_v12 }
 0x352   : > { %2594 = vrot.lane.b32.xlu1 %v2587_v60, %s2901_s28 }
 0x353   : > { %v2021_v62 = vpop.permute.xlu0 %2020 }
 0x354   : > { %v2029_v63 = vsel %vm559_vm6, %v2019_v29, %v2021_v62  ;;  %v2185_v0 = vpop.permute.xlu1 %2184 }
 0x355   : > { %2041 = vst [vmem:[#allocation5 + $0xf8] sm:$0xf] %v2029_v63 }
 0x357   : > { %v2349_v38 = vpop.permute.xlu0 %2348 }
 0x358   : > { %v3666_v3 = vsel %vm1117_vm0, %v2347_v50, %v2349_v38  ;;  %v2073_v5 = vpop.permute.xlu1 %2072 }
 0x35b   : > { %v2305_v43 = vpop.permute.xlu0 %2304 }
 0x35c   : > { %v3668_v45 = vpop.permute.xlu1 %2236 }
 0x35d   : > { %v3672_v8 = vsel %vm931_vm1, %v2235_v22, %v3668_v45 }
 0x35f   : > { %v2193_v9 = vpop.permute.xlu0 %2192 }
 0x360   : > { %v3674_v10 = vpop.permute.xlu1 %2124 }
 0x361   : > { %v3678_v11 = vsel %vm745_vm4, %v2123_v47, %v3674_v10 }
 0x363   : > { %v2081_v14 = vpop.permute.xlu0 %2080 }
 0x364   : > { %v3680_v16 = vpop.permute.xlu1 %2012 }
 0x365   : > { %v3684_v17 = vsel %vm559_vm6, %v2011_v51, %v3680_v16 }
 0x367   : > { %v1969_v18 = vpop.permute.xlu0 %1968 }
 0x368   : > { %v2361_v20 = vpop.permute.xlu1 %2360 }
 0x36b   : > { %v2299_v21 = vpop.permute.xlu0 %2298 }
 0x36c   : > { %v2312_v6 = vsel %vm1024_vm2, %v2297_v61, %v2299_v21  ;;  %v2247_v25 = vpop.permute.xlu1 %2246 }
 0x36d   : > { %2324 = vst [vmem:[#allocation5 + $0x148] sm:$0xf0] %v2312_v6  ;;  %v2254_v23 = vsel %vm931_vm1, %v2245_v54, %v2247_v25 }
 0x36e   : > { %2266 = vst [vmem:[#allocation5 + $0xb0] sm:$0xf] %v2254_v23 }
 0x36f   : > { %v2187_v24 = vpop.permute.xlu0 %2186 }
 0x370   : > { %v2200_v26 = vsel %vm838_vm5, %v2185_v0, %v2187_v24  ;;  %v2135_v15 = vpop.permute.xlu1 %2134 }
 0x371   : > { %2212 = vst [vmem:[#allocation5 + $0x118] sm:$0xf0] %v2200_v26  ;;  %v2142_v27 = vsel %vm745_vm4, %v2133_v28, %v2135_v15 }
 0x372   : > { %2154 = vst [vmem:[#allocation5 + $0x8] sm:$0xf] %v2142_v27 }
 0x373   : > { %v2075_v30 = vpop.permute.xlu0 %2074 }
 0x374   : > { %v2088_v31 = vsel %vm652_vm7, %v2073_v5, %v2075_v30  ;;  %v2023_v53 = vpop.permute.xlu1 %2022 }
 0x375   : > { %2100 = vst [vmem:[#allocation5 + $0xf8] sm:$0xf0] %v2088_v31  ;;  %v2030_v34 = vsel %vm559_vm6, %v2021_v62, %v2023_v53 }
 0x376   : > { %2042 = vst [vmem:[#allocation5 + $0xd8] sm:$0xf] %v2030_v34 }
 0x377   : > { %v3692_v57 = vpop.permute.xlu0 %2306 }
 0x378   : > { %v3696_v36 = vsel %vm1024_vm2, %v2305_v43, %v3692_v57  ;;  %v2353_v37 = vpop.permute.xlu1 %2352 }
 0x37b   : > { %v3698_v40 = vpop.permute.xlu0 %2194 }
 0x37c   : > { %v3702_v41 = vsel %vm838_vm5, %v2193_v9, %v3698_v40  ;;  %v2241_v13 = vpop.permute.xlu1 %2240 }
 0x37f   : > { %v3704_v4 = vpop.permute.xlu0 %2082 }
 0x380   : > { %v3708_v22 = vsel %vm652_vm7, %v2081_v14, %v3704_v4  ;;  %v2129_v42 = vpop.permute.xlu1 %2128 }
 0x383   : > { %v3710_v44 = vpop.permute.xlu0 %1970 }
 0x384   : > { %v3714_v29 = vsel %vm466_vm8, %v1969_v18, %v3710_v44  ;;  %v2351_v46 = vpop.permute.xlu1 %2350 }
 0x385   : > { %v2363_v47 = vsel %vm1117_vm0, %v2349_v38, %v2351_v46  ;;  %v2364_v1 = vsel %vm1117_vm0, %v2351_v46, %v2353_v37 }
 0x387   : > { %v2249_v49 = vpop.permute.xlu0 %2248 }
 0x388   : > { %v2255_v50 = vsel %vm931_vm1, %v2247_v25, %v2249_v49  ;;  %v2303_v39 = vpop.permute.xlu1 %2302  ;;  %v2420_v25 = vld [vmem:[#allocation5 + $0x38] sm:$0xf] }
 0x389   : > { %2267 = vst [vmem:[#allocation5 + $0x78] sm:$0xf] %v2255_v50  ;;  %v2402_v49 = vld [vmem:[#allocation5 + $0x118] sm:$0xff] }
 0x38b   : > { %v2137_v51 = vpop.permute.xlu0 %2136 }
 0x38c   : > { %v2143_v52 = vsel %vm745_vm4, %v2135_v15, %v2137_v51  ;;  %v2191_v54 = vpop.permute.xlu1 %2190 }
 0x38d   : > { %2155 = vst [vmem:[#allocation5 + $0x28] sm:$0xf] %v2143_v52 }
 0x38f   : > { %v2025_v55 = vpop.permute.xlu0 %2024 }
 0x390   : > { %v2031_v56 = vsel %vm559_vm6, %v2023_v53, %v2025_v55  ;;  %v2079_v59 = vpop.permute.xlu1 %2078  ;;  %v2393_v55 = vld [vmem:[#allocation5 + $0xf8] sm:$0xff] }
 0x391   : > { %2043 = vst [vmem:[#allocation5 + $0xe0] sm:$0xf] %v2031_v56 }
 0x393   : > { %v2359_v28 = vpop.permute.xlu0 %2358 }
 0x394   : > { %v2366_v60 = vsel %vm1117_vm0, %v3656_v58, %v2359_v28  ;;  %v2367_v12 = vsel %vm1117_vm0, %v2359_v28, %v2361_v20  ;;  %v2301_v61 = vpop.permute.xlu1 %2300 }
 0x395   : > { %2378 = vst [vmem:[#allocation5 + $0xb8] sm:$0xf] %v2366_v60  ;;  %2379 = vst [vmem:[#allocation5 + $0x88] sm:$0xf] %v2367_v12  ;;  %v2313_v62 = vsel %vm1024_vm2, %v2299_v21, %v2301_v61  ;;  %v2314_v63 = vsel %vm1024_vm2, %v2301_v61, %v2303_v39 }
 0x396   : > { %2325 = vst [vmem:[#allocation5 + $0xb0] sm:$0xf0] %v2313_v62  ;;  %2326 = vst [vmem:[#allocation5 + $0x78] sm:$0xf0] %v2314_v63 }
 0x397   : > { %v2239_v0 = vpop.permute.xlu0 %2238 }
 0x398   : > { %v2251_v38 = vsel %vm931_vm1, %v3668_v45, %v2239_v0  ;;  %v2252_v5 = vsel %vm931_vm1, %v2239_v0, %v2241_v13  ;;  %v2189_v43 = vpop.permute.xlu1 %2188 }
 0x399   : > { %v2201_v58 = vsel %vm838_vm5, %v2187_v24, %v2189_v43  ;;  %v2202_v9 = vsel %vm838_vm5, %v2189_v43, %v2191_v54 }
 0x39a   : > { %2213 = vst [vmem:[#allocation5 + $0x8] sm:$0xf0] %v2201_v58  ;;  %2214 = vst [vmem:[#allocation5 + $0x28] sm:$0xf0] %v2202_v9 }
 0x39b   : > { %v2127_v14 = vpop.permute.xlu0 %2126 }
 0x39c   : > { %v2139_v18 = vsel %vm745_vm4, %v3674_v10, %v2127_v14  ;;  %v2140_v20 = vsel %vm745_vm4, %v2127_v14, %v2129_v42  ;;  %v2421_v21 = vld [vmem:[#allocation5 + $0xb8] sm:$0xf]  ;;  %v2422_v6 = vld [vmem:[#allocation5 + $0x88] sm:$0xf]  ;;  %v2077_v45 = vpop.permute.xlu1 %2076 }
 0x39d   : > { %2753 = vmatprep.subr.msk.mxu1 %vm1246_vm3, %v2421_v21  ;;  %2818 = vmatpush3.msk.msra.mxu0 %vm1246_vm3, %v2422_v6  ;;  %v2089_v23 = vsel %vm652_vm7, %v2075_v30, %v2077_v45  ;;  %v2090_v24 = vsel %vm652_vm7, %v2077_v45, %v2079_v59  ;;  %v2412_v53 = vld [vmem:[#allocation5 + $0xb0] sm:$0xff] }
 0x39e   : > { %2754 = vmatpush1.msk.msra.mxu1 %vm1246_vm3, %v2420_v25  ;;  %2819 = vmatprep.subr.mxu0 %v3466_v33  ;;  %2101 = vst [vmem:[#allocation5 + $0xd8] sm:$0xf0] %v2089_v23  ;;  %2102 = vst [vmem:[#allocation5 + $0xe0] sm:$0xf0] %v2090_v24 }
 0x39f   : > { %v2015_v10 = vpop.permute.xlu0 %2014  ;;  %2447 = vmatprep.subr.mxu1 %v2363_v47  ;;  %2820 = vmatpush3.msra.mxu0 %v2364_v1 }
 0x3a0   : > { %v3742_v26 = vsel %vm559_vm6, %v3680_v16, %v2015_v10  ;;  %2448 = vmatpush1.msra.mxu1 %v3666_v3  ;;  %2821 = vmatprep.subr.mxu0 %v3466_v33  ;;  %v2309_v15 = vpop.permute.xlu1 %2308  ;;  %v2411_v16 = vld [vmem:[#allocation5 + $0x148] sm:$0xff]  ;;  %v2413_v3 = vld [vmem:[#allocation5 + $0x78] sm:$0xff] }
 0x3a1   : > { %v2316_v27 = vsel %vm1024_vm2, %v3692_v57, %v2309_v15  ;;  %v2403_v47 = vld [vmem:[#allocation5 + $0x8] sm:$0xff] }
 0x3a2   : > { %2449 = vmatprep.subr.mxu1 %v2316_v27 }
 0x3a3   : > { %v2311_v30 = vpop.permute.xlu0 %2310  ;;  %2450 = vmatpush1.msra.mxu1 %v3696_v36 }
 0x3a4   : > { %v2317_v31 = vsel %vm1024_vm2, %v2309_v15, %v2311_v30  ;;  %v2017_v34 = vpop.permute.xlu1 %2016  ;;  %2451 = vmatprep.subr.mxu1 %v2412_v53 }
 0x3a5   : > { %2822 = vmatpush3.msra.mxu0 %v2317_v31  ;;  %v2028_v37 = vsel %vm559_vm6, %v2015_v10, %v2017_v34  ;;  %2452 = vmatpush1.msra.mxu1 %v2411_v16  ;;  %v2395_v52 = vld [vmem:[#allocation5 + $0xe0] sm:$0xff] }
 0x3a6   : > { %2823 = vmatprep.subr.mxu0 %v3466_v33  ;;  %2453 = vmatprep.subr.mxu1 %v2251_v38 }
 0x3a7   : > { %v2199_v13 = vpop.permute.xlu0 %2198  ;;  %2824 = vmatpush3.msra.mxu0 %v2413_v3  ;;  %2454 = vmatpush1.msra.mxu1 %v3672_v8  ;;  %v2404_v8 = vld [vmem:[#allocation5 + $0x28] sm:$0xff] }
 0x3a8   : > { %2825 = vmatprep.subr.mxu0 %v3466_v33  ;;  %v2197_v57 = vpop.permute.xlu1 %2196 }
 0x3a9   : > { %2826 = vmatpush3.msra.mxu0 %v2252_v5  ;;  %v2204_v36 = vsel %vm838_vm5, %v3698_v40, %v2197_v57  ;;  %v2205_v42 = vsel %vm838_vm5, %v2197_v57, %v2199_v13 }
 0x3aa   : > { %2827 = vmatprep.subr.mxu0 %v3466_v33  ;;  %2455 = vmatprep.subr.mxu1 %v2204_v36 }
 0x3ab   : > { %v2087_v46 = vpop.permute.xlu0 %2086  ;;  %2828 = vmatpush3.msra.mxu0 %v2205_v42  ;;  %2456 = vmatpush1.msra.mxu1 %v3702_v41 }
 0x3ac   : > { %2829 = vmatprep.subr.mxu0 %v3466_v33  ;;  %v2085_v1 = vpop.permute.xlu1 %2084  ;;  %2457 = vmatprep.subr.mxu1 %v2403_v47 }
 0x3ad   : > { %2830 = vmatpush3.msra.mxu0 %v2404_v8  ;;  %v2092_v40 = vsel %vm652_vm7, %v3704_v4, %v2085_v1  ;;  %v2093_v50 = vsel %vm652_vm7, %v2085_v1, %v2087_v46  ;;  %2458 = vmatpush1.msra.mxu1 %v2402_v49  ;;  %v2394_v4 = vld [vmem:[#allocation5 + $0xd8] sm:$0xff] }
 0x3ae   : > { %2831 = vmatprep.subr.mxu0 %v3466_v33  ;;  %2459 = vmatprep.subr.mxu1 %v2139_v18 }
 0x3af   : > { %v1963_v39 = vpop.permute.xlu0 %1962  ;;  %2832 = vmatpush3.msra.mxu0 %v2140_v20  ;;  %2460 = vmatpush1.msra.mxu1 %v3678_v11 }
 0x3b0   : > { %2833 = vmatprep.subr.mxu0 %v3466_v33  ;;  %v1965_v41 = vpop.permute.xlu1 %1964  ;;  %2461 = vmatprep.subr.mxu1 %v2092_v40 }
 0x3b1   : > { %2834 = vmatpush3.msra.mxu0 %v2093_v50  ;;  %v1977_v51 = vsel %vm466_vm8, %v1963_v39, %v1965_v41  ;;  %2462 = vmatpush1.msra.mxu1 %v3708_v22 }
 0x3b2   : > { %2835 = vmatprep.subr.mxu0 %v3466_v33  ;;  %1989 = vst [vmem:[#allocation5 + $0x128] sm:$0xf0] %v1977_v51  ;;  %2463 = vmatprep.subr.mxu1 %v2394_v4 }
 0x3b3   : > { %v1961_v54 = vpop.permute.xlu0 %1960  ;;  %2836 = vmatpush3.msra.mxu0 %v2395_v52  ;;  %2464 = vmatpush1.msra.mxu1 %v2393_v55 }
 0x3b4   : > { %v1976_v11 = vsel %vm466_vm8, %v1961_v54, %v1963_v39  ;;  %2837 = vmatprep.subr.mxu0 %v3466_v33  ;;  %v1973_v56 = vpop.permute.xlu1 %1972  ;;  %2465 = vmatprep.subr.mxu1 %v3742_v26 }
 0x3b5   : > { %1988 = vst [vmem:[#allocation5 + $0xc8] sm:$0xf0] %v1976_v11  ;;  %2838 = vmatpush3.msra.mxu0 %v2028_v37  ;;  %v1980_v22 = vsel %vm466_vm8, %v3710_v44, %v1973_v56  ;;  %2466 = vmatpush1.msra.mxu1 %v3684_v17  ;;  %v2380_v17 = vld [vmem:[%s3811_s7] sm:$0xf] }
 0x3b6   : > { %2839 = vmatprep.subr.mxu0 %v3466_v33  ;;  %2467 = vmatprep.subr.mxu1 %v1980_v22 }
 0x3b7   : > { %v1967_v59 = vpop.permute.xlu0 %1966  ;;  %2468 = vmatpush1.msra.mxu1 %v3714_v29 }
 0x3b8   : > { %v1978_v28 = vsel %vm466_vm8, %v1965_v41, %v1967_v59  ;;  %v1975_v60 = vpop.permute.xlu1 %1974 }
 0x3b9   : > { %1990 = vst [vmem:[#allocation5 + $0x30] sm:$0xf0] %v1978_v28  ;;  %v1981_v12 = vsel %vm466_vm8, %v1973_v56, %v1975_v60  ;;  %v2385_v61 = vld [vmem:[#allocation5 + $0x128] sm:$0xff] }
 0x3ba   : > { %2469 = vmatprep.subr.mxu1 %v2385_v61  ;;  %2840 = vmatpush3.msra.mxu0 %v1981_v12 }
 0x3bb   : > { %2841 = vmatprep.subr.mxu0 %v3466_v33  ;;  %v2589_v63 = vpop.permute.xlu0 %2588 }
 0x3bc   : > { %v2384_v62 = vld [vmem:[#allocation5 + $0xc8] sm:$0xff] }
 0x3bd   : > { %2470 = vmatpush1.msra.mxu1 %v2384_v62 }
 0x3be   : > { %2471 = vmatprep.subr.mxu1 %v3540_v32 }
 0x3bf   : > { %2472 = vmatpush1.msra.mxu1 %v3528_v19  ;;  %v2593_v43 = vpop.permute.xlu0 %2592 }
 0x3c0   : > { %2755 = vmatmul.mubr.msk.f32.vlgmr.msra.gmra.mxu1 %vm838_vm5, %v2380_v17  ;;  %v2386_v44 = vld [vmem:[#allocation5 + $0x30] sm:$0xff] }
 0x3c1   : > { %2842 = vmatpush3.msra.mxu0 %v2386_v44 }
 0x3c2   : > { %2843 = vmatprep.subr.mxu0 %v3466_v33 }
 0x3c3   : > { %2844 = vmatpush3.msra.mxu0 %v3544_v35 }
 0x3c4   : > { %2846 = vmatmul.mubr.msk.f32.vlgmr.msra.gmra.mxu0 %vm838_vm5, %v2380_v17 }
 0x3c5   : > { %v2427_v29 = vpop.permute.xlu1 %2426 }
 0x3c9   : > { %v2591_v0 = vpop.permute.xlu1 %2590 }
 0x3ca   : > { %v2596_v5 = vsel %vm745_vm4, %v2589_v63, %v2591_v0  ;;  %v2597_v33 = vsel %vm745_vm4, %v2591_v0, %v2593_v43 }
 0x3cd   : > { %v2595_v19 = vpop.permute.xlu1 %2594 }
 0x3ce   : > { %v2598_v18 = vsel %vm745_vm4, %v2593_v43, %v2595_v19 }
 0x480   : > { %v2507_v38 = vpop.f32.mrf.mxu1 }
 0x481   : > { %v2508_v32 = vadd.f32 %v2507_v38, %v2427_v29 }
 0x482   : > { %v2509_v58 = vpop.f32.mrf.mxu1 }
 0x483   : > { %v2602_v9 = vadd.f32 %v2596_v5, %v2508_v32  ;;  %v2510_v14 = vadd.f32 %v2509_v58, %v2427_v29 }
 0x484   : > { %v2578_v35 = vpop.f32.mrf.mxu0 }
 0x485   : > { %v2611_v20 = vrot.slane %v2602_v9, 4  ;;  %v2603_v21 = vadd.f32 %v2597_v33, %v2510_v14  ;;  %v2579_v6 = vadd.f32 %v2578_v35, %v2427_v29 }
 0x486   : > { %v2847_v45 = vpop.f32.mrf.mxu0 }
 0x487   : > { %v2620_v25 = vsel %vm1246_vm3, %v3500_v48, %v2611_v20  ;;  %v2612_v23 = vrot.slane %v2603_v21, 4  ;;  %v2604_v24 = vadd.f32 %v2598_v18, %v2579_v6 }
 0x488   : > { %2626 = vst [vmem:[%s3506_s14 + $0x18] sm:$0xff] %v2620_v25 }
 0x489   : > { %v2621_v10 = vsel %vm1246_vm3, %v3511_v2, %v2612_v23  ;;  %v2613_v26 = vrot.slane %v2604_v24, 4 }
 0x48a   : > { %2627 = vst [vmem:[%s3506_s14 + $0x20] sm:$0xff] %v2621_v10 }
 0x48b   : > { %v2622_v15 = vsel %vm1246_vm3, %v3515_v7, %v2613_v26 }
 0x48c   : > { %2628 = vst [vmem:[%s3506_s14 + $0x28] sm:$0xff] %v2622_v15 }
 0x48d PF: > { %s20_s13 = sadd.s32 1, %s2896_s13  }
 0x48e   : > { %p17_p4 = scmp.ge.s32.totalorder %s20_s13, 4  }
 0x490   :  { %19 = sbr.rel (!%p17_p4) target bundleno = 1 (0x1), region = 99 }

</bundles_post_ra>
